<compile_context>
chip_gen: v6e
topology: v6e:2x2x1
jax: 0.10.0
libtpu: 0.0.40
codegen_flags: <defaults>
</compile_context>

<pallas_src>
import functools

import jax
import jax.numpy as jnp
from jax.experimental import pallas as pl
from jax.experimental.pallas import tpu as pltpu

EPS = 1e-5


# ------------------------------- Pallas kernel ------------------------------ #

def _resblock_kernel(*refs, Q, Ho, Wo, Cin, r0, cb, with_ds):
    """Fused ResidualBlock forward for one batch element.

    refs (with_ds=True):  xg, w1, s1, b1, w2, s2, b2, wd, sd, bd, out, h1_scratch
    refs (with_ds=False): xg, w1, s1, b1, w2, s2, b2, out, h1_scratch

    xg : (1, Hg, Wg, s*s*Cin) space-to-depth grouped, padded input (bf16)
    w1 : (Q*Q, s*s*Cin, Cout) conv1 taps folded per (qh,qw) group (bf16)
    w2 : (9, Cout, Cout)      conv2 taps (bf16)
    s*/b* : (1, Cout)         folded BatchNorm scale / bias (f32)
    wd : (Cin, Cout)          optional 1x1 downsample weight (bf16)
    out: (1, Ho, Wo, Cout)
    h1 : (Ho+2, Wo+2, Cout)   VMEM scratch holding conv1's padded activation
    """
    if with_ds:
        (xg_ref, w1_ref, s1_ref, b1_ref, w2_ref, s2_ref, b2_ref,
         wd_ref, sd_ref, bd_ref, o_ref, h1_ref) = refs
    else:
        (xg_ref, w1_ref, s1_ref, b1_ref, w2_ref, s2_ref, b2_ref,
         o_ref, h1_ref) = refs

    Cout = o_ref.shape[3]
    Cg = xg_ref.shape[3]
    xg = xg_ref[0]                                         # (Hg, Wg, Cg), VMEM

    # --- conv1: 3x3 stride-s (space-to-depth) + folded BN1 + ReLU ------------ #
    # Q*Q accumulating MXU matmuls on shifted contiguous views (no slab concat).
    acc1 = jnp.zeros((Ho * Wo, Cout), jnp.float32)
    for qh in range(Q):
        for qw in range(Q):
            patch = xg[qh:qh + Ho, qw:qw + Wo, :].reshape(Ho * Wo, Cg)
            acc1 = acc1 + jnp.dot(patch, w1_ref[qh * Q + qw],
                                  preferred_element_type=jnp.float32)
    acc1 = jnp.maximum(acc1 * s1_ref[...] + b1_ref[...], 0.0)

    # conv1 activation -> padded VMEM scratch: interior stored directly, only the
    # four 1-wide halo strips are zeroed (no full-size register temporary, and no
    # HBM round trip for the intermediate activation).
    zrow = jnp.zeros((1, Wo + 2, Cout), h1_ref.dtype)
    zcol = jnp.zeros((Ho + 2, 1, Cout), h1_ref.dtype)
    h1_ref[0:1, :, :] = zrow
    h1_ref[Ho + 1:Ho + 2, :, :] = zrow
    h1_ref[:, 0:1, :] = zcol
    h1_ref[:, Wo + 1:Wo + 2, :] = zcol
    h1_ref[1:1 + Ho, 1:1 + Wo, :] = acc1.reshape(Ho, Wo, Cout).astype(h1_ref.dtype)

    # --- conv2: 3x3 stride-1 on the scratch + folded BN2 --------------------- #
    acc2 = jnp.zeros((Ho * Wo, Cout), jnp.float32)
    for kh in range(3):
        for kw in range(3):
            patch = h1_ref[kh:kh + Ho, kw:kw + Wo, :].reshape(Ho * Wo, Cout)
            acc2 = acc2 + jnp.dot(patch, w2_ref[kh * 3 + kw],
                                  preferred_element_type=jnp.float32)
    acc2 = acc2 * s2_ref[...] + b2_ref[...]

    # --- residual branch: strided original x is a PLAIN slice of the grouped
    #     input already resident in VMEM (no extra DMA, no gather) ------------- #
    xr = xg[r0:r0 + Ho, r0:r0 + Wo, cb * Cin:(cb + 1) * Cin].reshape(Ho * Wo, Cin)
    if with_ds:                                            # fused 1x1 conv + BNd
        res = jnp.dot(xr, wd_ref[...], preferred_element_type=jnp.float32)
        res = res * sd_ref[...] + bd_ref[...]
    else:                                                  # identity (Cin == Cout)
        res = xr.astype(jnp.float32)

    out = jnp.maximum(acc2 + res, 0.0)                     # add + final ReLU
    o_ref[0] = out.reshape(Ho, Wo, Cout).astype(o_ref.dtype)


# ------------------------------ wrapper helpers ----------------------------- #

def _fold_bn(gamma, beta, mean, var, conv_bias=None):
    """Fold inference-mode BatchNorm (and optional conv bias) into scale/bias."""
    scale = gamma / jnp.sqrt(var + EPS)
    bias = beta - mean * scale
    if conv_bias is not None:
        bias = bias + conv_bias * scale
    return (scale.reshape(1, -1).astype(jnp.float32),
            bias.reshape(1, -1).astype(jnp.float32))


def _space_to_depth_pad(x_nhwc, s):
    """Pad spatial dims by 1 (conv halo, plus up to a multiple of s) and fold each
    s x s spatial block into channels: (N,H,W,C) -> (N, Hp/s, Wp/s, s*s*C)."""
    N, H, W, C = x_nhwc.shape
    Hp, Wp = H + 2, W + 2
    Hp2 = -(-Hp // s) * s
    Wp2 = -(-Wp // s) * s
    xp = jnp.pad(x_nhwc, ((0, 0), (1, 1 + Hp2 - Hp), (1, 1 + Wp2 - Wp), (0, 0)))
    xg = xp.reshape(N, Hp2 // s, s, Wp2 // s, s, C)
    xg = xg.transpose(0, 1, 3, 2, 4, 5).reshape(N, Hp2 // s, Wp2 // s, s * s * C)
    return xg


def _fold_conv3x3_weights(w_oihw, s):
    """(Cout, Cin, 3, 3) OIHW -> (Q*Q, s*s*Cin, Cout): one matmul weight per
    (qh, qw) group of the space-to-depth input (unused stride phases stay zero),
    matching the (ph, pw, c) channel layout of `_space_to_depth_pad`."""
    Cout, Cin, KH, KW = w_oihw.shape
    w_hwio = jnp.transpose(w_oihw, (2, 3, 1, 0))           # (3, 3, Cin, Cout)
    Q = (KH - 1) // s + 1
    wf = jnp.zeros((Q, Q, s, s, Cin, Cout), w_hwio.dtype)
    for kh in range(KH):
        for kw in range(KW):
            wf = wf.at[kh // s, kw // s, kh % s, kw % s].set(w_hwio[kh, kw])
    return wf.reshape(Q * Q, s * s * Cin, Cout)


# ------------------------------ ResidualBlock ------------------------------- #

def residual_block_pallas(x_nchw, p, s, compute_dtype=jnp.bfloat16,
                          out_dtype=jnp.float32):
    # Cast BEFORE the layout transpose / space-to-depth so those wrapper-side HBM
    # passes move bf16 instead of f32.
    x = jnp.transpose(x_nchw.astype(compute_dtype), (0, 2, 3, 1))   # NCHW -> NHWC
    N, H, W, Cin = x.shape
    Cout = p["w1"].shape[0]
    Ho = (H - 1) // s + 1
    Wo = (W - 1) // s + 1
    Q = (3 - 1) // s + 1

    # Space-to-depth grouped, padded input: feeds conv1 AND the residual branch.
    xg = _space_to_depth_pad(x, s)
    Hg, Wg, Cg = xg.shape[1:]

    w1f = _fold_conv3x3_weights(p["w1"], s).astype(compute_dtype)   # (Q*Q, Cg, Cout)
    s1, b1 = _fold_bn(p["g1"], p["be1"], p["m1"], p["v1"], p["b1"])
    w2f = _fold_conv3x3_weights(p["w2"], 1).astype(compute_dtype)   # (9, Cout, Cout)
    s2, b2 = _fold_bn(p["g2"], p["be2"], p["m2"], p["v2"], p["b2"])

    r0 = 1 if s == 1 else 0          # offset of the strided x inside the grouped input
    cb = 0 if s == 1 else s + 1      # phase-channel block of the strided x
    with_ds = (s != 1) or (Cin != Cout)

    args = [xg, w1f, s1, b1, w2f, s2, b2]
    in_specs = [
        pl.BlockSpec((1, Hg, Wg, Cg), lambda n: (n, 0, 0, 0)),
        pl.BlockSpec(w1f.shape, lambda n: (0, 0, 0)),
        pl.BlockSpec((1, Cout), lambda n: (0, 0)),
        pl.BlockSpec((1, Cout), lambda n: (0, 0)),
        pl.BlockSpec(w2f.shape, lambda n: (0, 0, 0)),
        pl.BlockSpec((1, Cout), lambda n: (0, 0)),
        pl.BlockSpec((1, Cout), lambda n: (0, 0)),
    ]
    if with_ds:
        wd = jnp.transpose(p["wd"][:, :, 0, 0], (1, 0)).astype(compute_dtype)
        sd, bd = _fold_bn(p["gd"], p["bed"], p["md"], p["vd"], None)
        args += [wd, sd, bd]
        in_specs += [
            pl.BlockSpec(wd.shape, lambda n: (0, 0)),
            pl.BlockSpec((1, Cout), lambda n: (0, 0)),
            pl.BlockSpec((1, Cout), lambda n: (0, 0)),
        ]

    kernel = functools.partial(_resblock_kernel, Q=Q, Ho=Ho, Wo=Wo, Cin=Cin,
                               r0=r0, cb=cb, with_ds=with_ds)
    out = pl.pallas_call(
        kernel,
        out_shape=jax.ShapeDtypeStruct((N, Ho, Wo, Cout), out_dtype),
        grid=(N,),
        in_specs=in_specs,
        out_specs=pl.BlockSpec((1, Ho, Wo, Cout), lambda n: (n, 0, 0, 0)),
        scratch_shapes=[pltpu.VMEM((Ho + 2, Wo + 2, Cout), compute_dtype)],
        compiler_params=pltpu.CompilerParams(dimension_semantics=("parallel",)),
    )(*args)

    return jnp.transpose(out, (0, 3, 1, 2))                # NHWC -> NCHW


# --------------------------- pure-JAX reference ----------------------------- #

def _conv2d_ref(x, w_oihw, b, stride, pad):
    y = jax.lax.conv_general_dilated(
        x, w_oihw, window_strides=(stride, stride),
        padding=((pad, pad), (pad, pad)),
        dimension_numbers=('NCHW', 'OIHW', 'NCHW'))
    if b is not None:
        y = y + b[None, :, None, None]
    return y


def _bn_ref(x, g, be, m, v):
    return ((x - m[None, :, None, None]) / jnp.sqrt(v[None, :, None, None] + EPS)
            * g[None, :, None, None] + be[None, :, None, None])


def residual_block_ref(x, p, s):
    Cin = x.shape[1]
    Cout = p["w1"].shape[0]
    out = jnp.maximum(_bn_ref(_conv2d_ref(x, p["w1"], p["b1"], s, 1),
                              p["g1"], p["be1"], p["m1"], p["v1"]), 0.0)
    out = _bn_ref(_conv2d_ref(out, p["w2"], p["b2"], 1, 1),
                  p["g2"], p["be2"], p["m2"], p["v2"])
    if s != 1 or Cin != Cout:
        identity = _bn_ref(_conv2d_ref(x, p["wd"], None, s, 0),
                           p["gd"], p["bed"], p["md"], p["vd"])
    else:
        identity = x
    return jnp.maximum(out + identity, 0.0)


# ------------------------------- param init --------------------------------- #

def init_params(key, Cin, Cout):
    ks = iter(jax.random.split(key, 24))   # 17 keys needed; split extra for safety

    def bn_params():
        g = 1.0 + 0.1 * jax.random.normal(next(ks), (Cout,), jnp.float32)
        be = 0.1 * jax.random.normal(next(ks), (Cout,), jnp.float32)
        m = 0.1 * jax.random.normal(next(ks), (Cout,), jnp.float32)
        v = 1.0 + 0.5 * jnp.abs(jax.random.normal(next(ks), (Cout,), jnp.float32))
        return g, be, m, v

    p = {}
    p["w1"] = 0.1 * jax.random.normal(next(ks), (Cout, Cin, 3, 3), jnp.float32)
    p["b1"] = 0.1 * jax.random.normal(next(ks), (Cout,), jnp.float32)
    p["g1"], p["be1"], p["m1"], p["v1"] = bn_params()
    p["w2"] = 0.1 * jax.random.normal(next(ks), (Cout, Cout, 3, 3), jnp.float32)
    p["b2"] = 0.1 * jax.random.normal(next(ks), (Cout,), jnp.float32)
    p["g2"], p["be2"], p["m2"], p["v2"] = bn_params()
    p["wd"] = 0.1 * jax.random.normal(next(ks), (Cout, Cin, 1, 1), jnp.float32)
    p["gd"], p["bed"], p["md"], p["vd"] = bn_params()
    return p


# ---------------------------------- main ------------------------------------ #

if __name__ == "__main__":
    configs = [
        # (N, Cin, Cout, H, W, s)
        (2, 4, 8, 16, 16, 2),    # stride-2 block with 1x1 downsample branch
        (2, 8, 8, 16, 16, 1),    # stride-1 block with identity residual
    ]
    for idx, (N, Cin, Cout, H, W, s) in enumerate(configs):
        key = jax.random.PRNGKey(0)
        kx, kp = jax.random.split(key)
        x = jax.random.normal(kx, (N, Cin, H, W), jnp.float32)
        params = init_params(kp, Cin, Cout)

        out = jax.block_until_ready(residual_block_pallas(x, params, s))
        ref = residual_block_ref(x, params, s)
        assert out.shape == ref.shape, (out.shape, ref.shape)
        if not bool(jnp.allclose(out, ref, atol=2e-2, rtol=2e-2)):
            max_err = float(jnp.max(jnp.abs(out - ref)))
            raise AssertionError(
                f"config {idx}: Pallas output mismatch, max abs err = {max_err}")

    print("KERNEL_OK")
</pallas_src>

<mosaic_0001>
module attributes {stable_mosaic.version = 11 : i64} {
  func.func @_resblock_kernel(%arg0: i32, %arg1: memref<1x9x9x16xbf16, #tpu.memory_space<vmem>>, %arg2: memref<4x16x8xbf16, #tpu.memory_space<vmem>>, %arg3: memref<1x8xf32, #tpu.memory_space<vmem>>, %arg4: memref<1x8xf32, #tpu.memory_space<vmem>>, %arg5: memref<9x8x8xbf16, #tpu.memory_space<vmem>>, %arg6: memref<1x8xf32, #tpu.memory_space<vmem>>, %arg7: memref<1x8xf32, #tpu.memory_space<vmem>>, %arg8: memref<4x8xbf16, #tpu.memory_space<vmem>>, %arg9: memref<1x8xf32, #tpu.memory_space<vmem>>, %arg10: memref<1x8xf32, #tpu.memory_space<vmem>>, %arg11: memref<1x8x8x8xf32, #tpu.memory_space<vmem>>, %arg12: memref<10x10x8xbf16, #tpu.memory_space<vmem>>) attributes {dimension_semantics = [#tpu.dimension_semantics<parallel>], iteration_bounds = array<i64: 2>, scalar_prefetch = 0 : i64, scratch_operands = 1 : i64, tpu.core_type = #tpu.core_type<tc>, window_params = [{transform_indices = @transform_0, window_bounds = array<i64: 1, 9, 9, 16>}, {pipeline_mode = #tpu.pipeline_mode<synchronous>, transform_indices = @transform_1, window_bounds = array<i64: 4, 16, 8>}, {pipeline_mode = #tpu.pipeline_mode<synchronous>, transform_indices = @transform_2, window_bounds = array<i64: 1, 8>}, {pipeline_mode = #tpu.pipeline_mode<synchronous>, transform_indices = @transform_3, window_bounds = array<i64: 1, 8>}, {pipeline_mode = #tpu.pipeline_mode<synchronous>, transform_indices = @transform_4, window_bounds = array<i64: 9, 8, 8>}, {pipeline_mode = #tpu.pipeline_mode<synchronous>, transform_indices = @transform_5, window_bounds = array<i64: 1, 8>}, {pipeline_mode = #tpu.pipeline_mode<synchronous>, transform_indices = @transform_6, window_bounds = array<i64: 1, 8>}, {pipeline_mode = #tpu.pipeline_mode<synchronous>, transform_indices = @transform_7, window_bounds = array<i64: 4, 8>}, {pipeline_mode = #tpu.pipeline_mode<synchronous>, transform_indices = @transform_8, window_bounds = array<i64: 1, 8>}, {pipeline_mode = #tpu.pipeline_mode<synchronous>, transform_indices = @transform_9, window_bounds = array<i64: 1, 8>}, {transform_indices = @transform_10, window_bounds = array<i64: 1, 8, 8, 8>}]} {
    %c0 = arith.constant 0 : index
    %c0_0 = arith.constant 0 : index
    %c0_1 = arith.constant 0 : index
    %c0_2 = arith.constant 0 : index
    %0 = vector.load %arg1[%c0, %c0_0, %c0_1, %c0_2] : memref<1x9x9x16xbf16, #tpu.memory_space<vmem>>, vector<1x9x9x16xbf16>
    %1 = vector.shape_cast %0 : vector<1x9x9x16xbf16> to vector<9x9x16xbf16>
    %cst = arith.constant 0.000000e+00 : f32
    %2 = vector.broadcast %cst : f32 to vector<64x8xf32>
    %3 = vector.extract_strided_slice %1 {offsets = [0, 0, 0], sizes = [8, 8, 16], strides = [1, 1, 1]} : vector<9x9x16xbf16> to vector<8x8x16xbf16>
    %4 = vector.shape_cast %3 : vector<8x8x16xbf16> to vector<64x16xbf16>
    %c0_3 = arith.constant 0 : index
    %c0_4 = arith.constant 0 : index
    %c0_5 = arith.constant 0 : index
    %5 = vector.load %arg2[%c0_3, %c0_4, %c0_5] : memref<4x16x8xbf16, #tpu.memory_space<vmem>>, vector<1x16x8xbf16>
    %6 = vector.shape_cast %5 : vector<1x16x8xbf16> to vector<16x8xbf16>
    %cst_6 = arith.constant dense<0.000000e+00> : vector<64x8xf32>
    %7 = tpu.matmul %4, %6, %cst_6 {dimension_numbers = #tpu.dot_dimension_numbers<[1], [0], [0], [1], [0, 0, 1, 1], [], []>} : vector<64x16xbf16>, vector<16x8xbf16>, vector<64x8xf32> -> vector<64x8xf32>
    %8 = arith.addf %2, %7 : vector<64x8xf32>
    %9 = vector.extract_strided_slice %1 {offsets = [0, 1, 0], sizes = [8, 8, 16], strides = [1, 1, 1]} : vector<9x9x16xbf16> to vector<8x8x16xbf16>
    %10 = vector.shape_cast %9 : vector<8x8x16xbf16> to vector<64x16xbf16>
    %c1 = arith.constant 1 : index
    %c0_7 = arith.constant 0 : index
    %c0_8 = arith.constant 0 : index
    %11 = vector.load %arg2[%c1, %c0_7, %c0_8] : memref<4x16x8xbf16, #tpu.memory_space<vmem>>, vector<1x16x8xbf16>
    %12 = vector.shape_cast %11 : vector<1x16x8xbf16> to vector<16x8xbf16>
    %cst_9 = arith.constant dense<0.000000e+00> : vector<64x8xf32>
    %13 = tpu.matmul %10, %12, %cst_9 {dimension_numbers = #tpu.dot_dimension_numbers<[1], [0], [0], [1], [0, 0, 1, 1], [], []>} : vector<64x16xbf16>, vector<16x8xbf16>, vector<64x8xf32> -> vector<64x8xf32>
    %14 = arith.addf %8, %13 : vector<64x8xf32>
    %15 = vector.extract_strided_slice %1 {offsets = [1, 0, 0], sizes = [8, 8, 16], strides = [1, 1, 1]} : vector<9x9x16xbf16> to vector<8x8x16xbf16>
    %16 = vector.shape_cast %15 : vector<8x8x16xbf16> to vector<64x16xbf16>
    %c2 = arith.constant 2 : index
    %c0_10 = arith.constant 0 : index
    %c0_11 = arith.constant 0 : index
    %17 = vector.load %arg2[%c2, %c0_10, %c0_11] : memref<4x16x8xbf16, #tpu.memory_space<vmem>>, vector<1x16x8xbf16>
    %18 = vector.shape_cast %17 : vector<1x16x8xbf16> to vector<16x8xbf16>
    %cst_12 = arith.constant dense<0.000000e+00> : vector<64x8xf32>
    %19 = tpu.matmul %16, %18, %cst_12 {dimension_numbers = #tpu.dot_dimension_numbers<[1], [0], [0], [1], [0, 0, 1, 1], [], []>} : vector<64x16xbf16>, vector<16x8xbf16>, vector<64x8xf32> -> vector<64x8xf32>
    %20 = arith.addf %14, %19 : vector<64x8xf32>
    %21 = vector.extract_strided_slice %1 {offsets = [1, 1, 0], sizes = [8, 8, 16], strides = [1, 1, 1]} : vector<9x9x16xbf16> to vector<8x8x16xbf16>
    %22 = vector.shape_cast %21 : vector<8x8x16xbf16> to vector<64x16xbf16>
    %c3 = arith.constant 3 : index
    %c0_13 = arith.constant 0 : index
    %c0_14 = arith.constant 0 : index
    %23 = vector.load %arg2[%c3, %c0_13, %c0_14] : memref<4x16x8xbf16, #tpu.memory_space<vmem>>, vector<1x16x8xbf16>
    %24 = vector.shape_cast %23 : vector<1x16x8xbf16> to vector<16x8xbf16>
    %cst_15 = arith.constant dense<0.000000e+00> : vector<64x8xf32>
    %25 = tpu.matmul %22, %24, %cst_15 {dimension_numbers = #tpu.dot_dimension_numbers<[1], [0], [0], [1], [0, 0, 1, 1], [], []>} : vector<64x16xbf16>, vector<16x8xbf16>, vector<64x8xf32> -> vector<64x8xf32>
    %26 = arith.addf %20, %25 : vector<64x8xf32>
    %c0_16 = arith.constant 0 : index
    %c0_17 = arith.constant 0 : index
    %27 = vector.load %arg3[%c0_16, %c0_17] : memref<1x8xf32, #tpu.memory_space<vmem>>, vector<1x8xf32>
    %28 = vector.broadcast %27 : vector<1x8xf32> to vector<64x8xf32>
    %29 = arith.mulf %26, %28 : vector<64x8xf32>
    %c0_18 = arith.constant 0 : index
    %c0_19 = arith.constant 0 : index
    %30 = vector.load %arg4[%c0_18, %c0_19] : memref<1x8xf32, #tpu.memory_space<vmem>>, vector<1x8xf32>
    %31 = vector.broadcast %30 : vector<1x8xf32> to vector<64x8xf32>
    %32 = arith.addf %29, %31 : vector<64x8xf32>
    %cst_20 = arith.constant 0.000000e+00 : f32
    %33 = vector.broadcast %cst_20 : f32 to vector<64x8xf32>
    %34 = arith.maximumf %32, %33 : vector<64x8xf32>
    %cst_21 = arith.constant 0.000000e+00 : bf16
    %35 = vector.broadcast %cst_21 : bf16 to vector<1x10x8xbf16>
    %cst_22 = arith.constant 0.000000e+00 : bf16
    %36 = vector.broadcast %cst_22 : bf16 to vector<10x1x8xbf16>
    %c0_23 = arith.constant 0 : index
    %c0_24 = arith.constant 0 : index
    %c0_25 = arith.constant 0 : index
    %37 = vector.load %arg12[%c0_23, %c0_24, %c0_25] : memref<10x10x8xbf16, #tpu.memory_space<vmem>>, vector<1x10x8xbf16>
    tpu.vector_store %arg12[%c0_23, %c0_24, %c0_25], %35 {strides = array<i32>} : memref<10x10x8xbf16, #tpu.memory_space<vmem>>, vector<1x10x8xbf16>,
    %c9 = arith.constant 9 : index
    %c0_26 = arith.constant 0 : index
    %c0_27 = arith.constant 0 : index
    %38 = vector.load %arg12[%c9, %c0_26, %c0_27] : memref<10x10x8xbf16, #tpu.memory_space<vmem>>, vector<1x10x8xbf16>
    tpu.vector_store %arg12[%c9, %c0_26, %c0_27], %35 {strides = array<i32>} : memref<10x10x8xbf16, #tpu.memory_space<vmem>>, vector<1x10x8xbf16>,
    %c0_28 = arith.constant 0 : index
    %c0_29 = arith.constant 0 : index
    %c0_30 = arith.constant 0 : index
    %39 = vector.load %arg12[%c0_28, %c0_29, %c0_30] : memref<10x10x8xbf16, #tpu.memory_space<vmem>>, vector<10x1x8xbf16>
    tpu.vector_store %arg12[%c0_28, %c0_29, %c0_30], %36 {strides = array<i32>} : memref<10x10x8xbf16, #tpu.memory_space<vmem>>, vector<10x1x8xbf16>,
    %c0_31 = arith.constant 0 : index
    %c9_32 = arith.constant 9 : index
    %c0_33 = arith.constant 0 : index
    %40 = vector.load %arg12[%c0_31, %c9_32, %c0_33] : memref<10x10x8xbf16, #tpu.memory_space<vmem>>, vector<10x1x8xbf16>
    tpu.vector_store %arg12[%c0_31, %c9_32, %c0_33], %36 {strides = array<i32>} : memref<10x10x8xbf16, #tpu.memory_space<vmem>>, vector<10x1x8xbf16>,
    %41 = vector.shape_cast %34 : vector<64x8xf32> to vector<8x8x8xf32>
    %42 = arith.truncf %41 : vector<8x8x8xf32> to vector<8x8x8xbf16>
    %c1_34 = arith.constant 1 : index
    %c1_35 = arith.constant 1 : index
    %c0_36 = arith.constant 0 : index
    %43 = vector.load %arg12[%c1_34, %c1_35, %c0_36] : memref<10x10x8xbf16, #tpu.memory_space<vmem>>, vector<8x8x8xbf16>
    tpu.vector_store %arg12[%c1_34, %c1_35, %c0_36], %42 {strides = array<i32>} : memref<10x10x8xbf16, #tpu.memory_space<vmem>>, vector<8x8x8xbf16>,
    %cst_37 = arith.constant 0.000000e+00 : f32
    %44 = vector.broadcast %cst_37 : f32 to vector<64x8xf32>
    %c0_38 = arith.constant 0 : index
    %c0_39 = arith.constant 0 : index
    %c0_40 = arith.constant 0 : index
    %45 = vector.load %arg12[%c0_38, %c0_39, %c0_40] : memref<10x10x8xbf16, #tpu.memory_space<vmem>>, vector<8x8x8xbf16>
    %46 = vector.shape_cast %45 : vector<8x8x8xbf16> to vector<64x8xbf16>
    %c0_41 = arith.constant 0 : index
    %c0_42 = arith.constant 0 : index
    %c0_43 = arith.constant 0 : index
    %47 = vector.load %arg5[%c0_41, %c0_42, %c0_43] : memref<9x8x8xbf16, #tpu.memory_space<vmem>>, vector<1x8x8xbf16>
    %48 = vector.shape_cast %47 : vector<1x8x8xbf16> to vector<8x8xbf16>
    %cst_44 = arith.constant dense<0.000000e+00> : vector<64x8xf32>
    %49 = tpu.matmul %46, %48, %cst_44 {dimension_numbers = #tpu.dot_dimension_numbers<[1], [0], [0], [1], [0, 0, 1, 1], [], []>} : vector<64x8xbf16>, vector<8x8xbf16>, vector<64x8xf32> -> vector<64x8xf32>
    %50 = arith.addf %44, %49 : vector<64x8xf32>
    %c0_45 = arith.constant 0 : index
    %c1_46 = arith.constant 1 : index
    %c0_47 = arith.constant 0 : index
    %51 = vector.load %arg12[%c0_45, %c1_46, %c0_47] : memref<10x10x8xbf16, #tpu.memory_space<vmem>>, vector<8x8x8xbf16>
    %52 = vector.shape_cast %51 : vector<8x8x8xbf16> to vector<64x8xbf16>
    %c1_48 = arith.constant 1 : index
    %c0_49 = arith.constant 0 : index
    %c0_50 = arith.constant 0 : index
    %53 = vector.load %arg5[%c1_48, %c0_49, %c0_50] : memref<9x8x8xbf16, #tpu.memory_space<vmem>>, vector<1x8x8xbf16>
    %54 = vector.shape_cast %53 : vector<1x8x8xbf16> to vector<8x8xbf16>
    %cst_51 = arith.constant dense<0.000000e+00> : vector<64x8xf32>
    %55 = tpu.matmul %52, %54, %cst_51 {dimension_numbers = #tpu.dot_dimension_numbers<[1], [0], [0], [1], [0, 0, 1, 1], [], []>} : vector<64x8xbf16>, vector<8x8xbf16>, vector<64x8xf32> -> vector<64x8xf32>
    %56 = arith.addf %50, %55 : vector<64x8xf32>
    %c0_52 = arith.constant 0 : index
    %c2_53 = arith.constant 2 : index
    %c0_54 = arith.constant 0 : index
    %57 = vector.load %arg12[%c0_52, %c2_53, %c0_54] : memref<10x10x8xbf16, #tpu.memory_space<vmem>>, vector<8x8x8xbf16>
    %58 = vector.shape_cast %57 : vector<8x8x8xbf16> to vector<64x8xbf16>
    %c2_55 = arith.constant 2 : index
    %c0_56 = arith.constant 0 : index
    %c0_57 = arith.constant 0 : index
    %59 = vector.load %arg5[%c2_55, %c0_56, %c0_57] : memref<9x8x8xbf16, #tpu.memory_space<vmem>>, vector<1x8x8xbf16>
    %60 = vector.shape_cast %59 : vector<1x8x8xbf16> to vector<8x8xbf16>
    %cst_58 = arith.constant dense<0.000000e+00> : vector<64x8xf32>
    %61 = tpu.matmul %58, %60, %cst_58 {dimension_numbers = #tpu.dot_dimension_numbers<[1], [0], [0], [1], [0, 0, 1, 1], [], []>} : vector<64x8xbf16>, vector<8x8xbf16>, vector<64x8xf32> -> vector<64x8xf32>
    %62 = arith.addf %56, %61 : vector<64x8xf32>
    %c1_59 = arith.constant 1 : index
    %c0_60 = arith.constant 0 : index
    %c0_61 = arith.constant 0 : index
    %63 = vector.load %arg12[%c1_59, %c0_60, %c0_61] : memref<10x10x8xbf16, #tpu.memory_space<vmem>>, vector<8x8x8xbf16>
    %64 = vector.shape_cast %63 : vector<8x8x8xbf16> to vector<64x8xbf16>
    %c3_62 = arith.constant 3 : index
    %c0_63 = arith.constant 0 : index
    %c0_64 = arith.constant 0 : index
    %65 = vector.load %arg5[%c3_62, %c0_63, %c0_64] : memref<9x8x8xbf16, #tpu.memory_space<vmem>>, vector<1x8x8xbf16>
    %66 = vector.shape_cast %65 : vector<1x8x8xbf16> to vector<8x8xbf16>
    %cst_65 = arith.constant dense<0.000000e+00> : vector<64x8xf32>
    %67 = tpu.matmul %64, %66, %cst_65 {dimension_numbers = #tpu.dot_dimension_numbers<[1], [0], [0], [1], [0, 0, 1, 1], [], []>} : vector<64x8xbf16>, vector<8x8xbf16>, vector<64x8xf32> -> vector<64x8xf32>
    %68 = arith.addf %62, %67 : vector<64x8xf32>
    %c1_66 = arith.constant 1 : index
    %c1_67 = arith.constant 1 : index
    %c0_68 = arith.constant 0 : index
    %69 = vector.load %arg12[%c1_66, %c1_67, %c0_68] : memref<10x10x8xbf16, #tpu.memory_space<vmem>>, vector<8x8x8xbf16>
    %70 = vector.shape_cast %69 : vector<8x8x8xbf16> to vector<64x8xbf16>
    %c4 = arith.constant 4 : index
    %c0_69 = arith.constant 0 : index
    %c0_70 = arith.constant 0 : index
    %71 = vector.load %arg5[%c4, %c0_69, %c0_70] : memref<9x8x8xbf16, #tpu.memory_space<vmem>>, vector<1x8x8xbf16>
    %72 = vector.shape_cast %71 : vector<1x8x8xbf16> to vector<8x8xbf16>
    %cst_71 = arith.constant dense<0.000000e+00> : vector<64x8xf32>
    %73 = tpu.matmul %70, %72, %cst_71 {dimension_numbers = #tpu.dot_dimension_numbers<[1], [0], [0], [1], [0, 0, 1, 1], [], []>} : vector<64x8xbf16>, vector<8x8xbf16>, vector<64x8xf32> -> vector<64x8xf32>
    %74 = arith.addf %68, %73 : vector<64x8xf32>
    %c1_72 = arith.constant 1 : index
    %c2_73 = arith.constant 2 : index
    %c0_74 = arith.constant 0 : index
    %75 = vector.load %arg12[%c1_72, %c2_73, %c0_74] : memref<10x10x8xbf16, #tpu.memory_space<vmem>>, vector<8x8x8xbf16>
    %76 = vector.shape_cast %75 : vector<8x8x8xbf16> to vector<64x8xbf16>
    %c5 = arith.constant 5 : index
    %c0_75 = arith.constant 0 : index
    %c0_76 = arith.constant 0 : index
    %77 = vector.load %arg5[%c5, %c0_75, %c0_76] : memref<9x8x8xbf16, #tpu.memory_space<vmem>>, vector<1x8x8xbf16>
    %78 = vector.shape_cast %77 : vector<1x8x8xbf16> to vector<8x8xbf16>
    %cst_77 = arith.constant dense<0.000000e+00> : vector<64x8xf32>
    %79 = tpu.matmul %76, %78, %cst_77 {dimension_numbers = #tpu.dot_dimension_numbers<[1], [0], [0], [1], [0, 0, 1, 1], [], []>} : vector<64x8xbf16>, vector<8x8xbf16>, vector<64x8xf32> -> vector<64x8xf32>
    %80 = arith.addf %74, %79 : vector<64x8xf32>
    %c2_78 = arith.constant 2 : index
    %c0_79 = arith.constant 0 : index
    %c0_80 = arith.constant 0 : index
    %81 = vector.load %arg12[%c2_78, %c0_79, %c0_80] : memref<10x10x8xbf16, #tpu.memory_space<vmem>>, vector<8x8x8xbf16>
    %82 = vector.shape_cast %81 : vector<8x8x8xbf16> to vector<64x8xbf16>
    %c6 = arith.constant 6 : index
    %c0_81 = arith.constant 0 : index
    %c0_82 = arith.constant 0 : index
    %83 = vector.load %arg5[%c6, %c0_81, %c0_82] : memref<9x8x8xbf16, #tpu.memory_space<vmem>>, vector<1x8x8xbf16>
    %84 = vector.shape_cast %83 : vector<1x8x8xbf16> to vector<8x8xbf16>
    %cst_83 = arith.constant dense<0.000000e+00> : vector<64x8xf32>
    %85 = tpu.matmul %82, %84, %cst_83 {dimension_numbers = #tpu.dot_dimension_numbers<[1], [0], [0], [1], [0, 0, 1, 1], [], []>} : vector<64x8xbf16>, vector<8x8xbf16>, vector<64x8xf32> -> vector<64x8xf32>
    %86 = arith.addf %80, %85 : vector<64x8xf32>
    %c2_84 = arith.constant 2 : index
    %c1_85 = arith.constant 1 : index
    %c0_86 = arith.constant 0 : index
    %87 = vector.load %arg12[%c2_84, %c1_85, %c0_86] : memref<10x10x8xbf16, #tpu.memory_space<vmem>>, vector<8x8x8xbf16>
    %88 = vector.shape_cast %87 : vector<8x8x8xbf16> to vector<64x8xbf16>
    %c7 = arith.constant 7 : index
    %c0_87 = arith.constant 0 : index
    %c0_88 = arith.constant 0 : index
    %89 = vector.load %arg5[%c7, %c0_87, %c0_88] : memref<9x8x8xbf16, #tpu.memory_space<vmem>>, vector<1x8x8xbf16>
    %90 = vector.shape_cast %89 : vector<1x8x8xbf16> to vector<8x8xbf16>
    %cst_89 = arith.constant dense<0.000000e+00> : vector<64x8xf32>
    %91 = tpu.matmul %88, %90, %cst_89 {dimension_numbers = #tpu.dot_dimension_numbers<[1], [0], [0], [1], [0, 0, 1, 1], [], []>} : vector<64x8xbf16>, vector<8x8xbf16>, vector<64x8xf32> -> vector<64x8xf32>
    %92 = arith.addf %86, %91 : vector<64x8xf32>
    %c2_90 = arith.constant 2 : index
    %c2_91 = arith.constant 2 : index
    %c0_92 = arith.constant 0 : index
    %93 = vector.load %arg12[%c2_90, %c2_91, %c0_92] : memref<10x10x8xbf16, #tpu.memory_space<vmem>>, vector<8x8x8xbf16>
    %94 = vector.shape_cast %93 : vector<8x8x8xbf16> to vector<64x8xbf16>
    %c8 = arith.constant 8 : index
    %c0_93 = arith.constant 0 : index
    %c0_94 = arith.constant 0 : index
    %95 = vector.load %arg5[%c8, %c0_93, %c0_94] : memref<9x8x8xbf16, #tpu.memory_space<vmem>>, vector<1x8x8xbf16>
    %96 = vector.shape_cast %95 : vector<1x8x8xbf16> to vector<8x8xbf16>
    %cst_95 = arith.constant dense<0.000000e+00> : vector<64x8xf32>
    %97 = tpu.matmul %94, %96, %cst_95 {dimension_numbers = #tpu.dot_dimension_numbers<[1], [0], [0], [1], [0, 0, 1, 1], [], []>} : vector<64x8xbf16>, vector<8x8xbf16>, vector<64x8xf32> -> vector<64x8xf32>
    %98 = arith.addf %92, %97 : vector<64x8xf32>
    %c0_96 = arith.constant 0 : index
    %c0_97 = arith.constant 0 : index
    %99 = vector.load %arg6[%c0_96, %c0_97] : memref<1x8xf32, #tpu.memory_space<vmem>>, vector<1x8xf32>
    %100 = vector.broadcast %99 : vector<1x8xf32> to vector<64x8xf32>
    %101 = arith.mulf %98, %100 : vector<64x8xf32>
    %c0_98 = arith.constant 0 : index
    %c0_99 = arith.constant 0 : index
    %102 = vector.load %arg7[%c0_98, %c0_99] : memref<1x8xf32, #tpu.memory_space<vmem>>, vector<1x8xf32>
    %103 = vector.broadcast %102 : vector<1x8xf32> to vector<64x8xf32>
    %104 = arith.addf %101, %103 : vector<64x8xf32>
    %105 = vector.extract_strided_slice %1 {offsets = [0, 0, 12], sizes = [8, 8, 4], strides = [1, 1, 1]} : vector<9x9x16xbf16> to vector<8x8x4xbf16>
    %106 = vector.shape_cast %105 : vector<8x8x4xbf16> to vector<64x4xbf16>
    %c0_100 = arith.constant 0 : index
    %c0_101 = arith.constant 0 : index
    %107 = vector.load %arg8[%c0_100, %c0_101] : memref<4x8xbf16, #tpu.memory_space<vmem>>, vector<4x8xbf16>
    %cst_102 = arith.constant dense<0.000000e+00> : vector<64x8xf32>
    %108 = tpu.matmul %106, %107, %cst_102 {dimension_numbers = #tpu.dot_dimension_numbers<[1], [0], [0], [1], [0, 0, 1, 1], [], []>} : vector<64x4xbf16>, vector<4x8xbf16>, vector<64x8xf32> -> vector<64x8xf32>
    %c0_103 = arith.constant 0 : index
    %c0_104 = arith.constant 0 : index
    %109 = vector.load %arg9[%c0_103, %c0_104] : memref<1x8xf32, #tpu.memory_space<vmem>>, vector<1x8xf32>
    %110 = vector.broadcast %109 : vector<1x8xf32> to vector<64x8xf32>
    %111 = arith.mulf %108, %110 : vector<64x8xf32>
    %c0_105 = arith.constant 0 : index
    %c0_106 = arith.constant 0 : index
    %112 = vector.load %arg10[%c0_105, %c0_106] : memref<1x8xf32, #tpu.memory_space<vmem>>, vector<1x8xf32>
    %113 = vector.broadcast %112 : vector<1x8xf32> to vector<64x8xf32>
    %114 = arith.addf %111, %113 : vector<64x8xf32>
    %115 = arith.addf %104, %114 : vector<64x8xf32>
    %cst_107 = arith.constant 0.000000e+00 : f32
    %116 = vector.broadcast %cst_107 : f32 to vector<64x8xf32>
    %117 = arith.maximumf %115, %116 : vector<64x8xf32>
    %118 = vector.shape_cast %117 : vector<64x8xf32> to vector<8x8x8xf32>
    %c0_108 = arith.constant 0 : index
    %c0_109 = arith.constant 0 : index
    %c0_110 = arith.constant 0 : index
    %c0_111 = arith.constant 0 : index
    %119 = vector.load %arg11[%c0_108, %c0_109, %c0_110, %c0_111] : memref<1x8x8x8xf32, #tpu.memory_space<vmem>>, vector<1x8x8x8xf32>
    %120 = vector.shape_cast %119 : vector<1x8x8x8xf32> to vector<8x8x8xf32>
    %121 = vector.shape_cast %118 : vector<8x8x8xf32> to vector<1x8x8x8xf32>
    tpu.vector_store %arg11[%c0_108, %c0_109, %c0_110, %c0_111], %121 {strides = array<i32>} : memref<1x8x8x8xf32, #tpu.memory_space<vmem>>, vector<1x8x8x8xf32>,
    return
  }
  func.func @transform_0(%arg0: i32) -> (i32, i32, i32, i32) {
    %c0_i32 = arith.constant 0 : i32
    %c0_i32_0 = arith.constant 0 : i32
    %c0_i32_1 = arith.constant 0 : i32
    %c0_i32_2 = arith.constant 0 : i32
    return %arg0, %c0_i32, %c0_i32_0, %c0_i32_1 : i32, i32, i32, i32
  }
  func.func @transform_1(%arg0: i32) -> (i32, i32, i32) {
    %c0_i32 = arith.constant 0 : i32
    %c0_i32_0 = arith.constant 0 : i32
    %c0_i32_1 = arith.constant 0 : i32
    %c0_i32_2 = arith.constant 0 : i32
    return %c0_i32, %c0_i32_0, %c0_i32_1 : i32, i32, i32
  }
  func.func @transform_2(%arg0: i32) -> (i32, i32) {
    %c0_i32 = arith.constant 0 : i32
    %c0_i32_0 = arith.constant 0 : i32
    %c0_i32_1 = arith.constant 0 : i32
    return %c0_i32, %c0_i32_0 : i32, i32
  }
  func.func @transform_3(%arg0: i32) -> (i32, i32) {
    %c0_i32 = arith.constant 0 : i32
    %c0_i32_0 = arith.constant 0 : i32
    %c0_i32_1 = arith.constant 0 : i32
    return %c0_i32, %c0_i32_0 : i32, i32
  }
  func.func @transform_4(%arg0: i32) -> (i32, i32, i32) {
    %c0_i32 = arith.constant 0 : i32
    %c0_i32_0 = arith.constant 0 : i32
    %c0_i32_1 = arith.constant 0 : i32
    %c0_i32_2 = arith.constant 0 : i32
    return %c0_i32, %c0_i32_0, %c0_i32_1 : i32, i32, i32
  }
  func.func @transform_5(%arg0: i32) -> (i32, i32) {
    %c0_i32 = arith.constant 0 : i32
    %c0_i32_0 = arith.constant 0 : i32
    %c0_i32_1 = arith.constant 0 : i32
    return %c0_i32, %c0_i32_0 : i32, i32
  }
  func.func @transform_6(%arg0: i32) -> (i32, i32) {
    %c0_i32 = arith.constant 0 : i32
    %c0_i32_0 = arith.constant 0 : i32
    %c0_i32_1 = arith.constant 0 : i32
    return %c0_i32, %c0_i32_0 : i32, i32
  }
  func.func @transform_7(%arg0: i32) -> (i32, i32) {
    %c0_i32 = arith.constant 0 : i32
    %c0_i32_0 = arith.constant 0 : i32
    %c0_i32_1 = arith.constant 0 : i32
    return %c0_i32, %c0_i32_0 : i32, i32
  }
  func.func @transform_8(%arg0: i32) -> (i32, i32) {
    %c0_i32 = arith.constant 0 : i32
    %c0_i32_0 = arith.constant 0 : i32
    %c0_i32_1 = arith.constant 0 : i32
    return %c0_i32, %c0_i32_0 : i32, i32
  }
  func.func @transform_9(%arg0: i32) -> (i32, i32) {
    %c0_i32 = arith.constant 0 : i32
    %c0_i32_0 = arith.constant 0 : i32
    %c0_i32_1 = arith.constant 0 : i32
    return %c0_i32, %c0_i32_0 : i32, i32
  }
  func.func @transform_10(%arg0: i32) -> (i32, i32, i32, i32) {
    %c0_i32 = arith.constant 0 : i32
    %c0_i32_0 = arith.constant 0 : i32
    %c0_i32_1 = arith.constant 0 : i32
    %c0_i32_2 = arith.constant 0 : i32
    return %arg0, %c0_i32, %c0_i32_0, %c0_i32_1 : i32, i32, i32, i32
  }
}

</mosaic_0001>

<bundles_post_ra>
// kernel: tpu_custom_call.1
= control target key start
LH: loop header
LB: loop body
LE: loop exit
PB: predicated region body
PF: predicated region fallthrough
CT: control target
= control target key end

     0   :  { %15 = vsyncpa [#allocation4], 0  ;;  %s4473_s0 = inlined_call_operand.vmem [shape: bf16[2,9,9,16], index: 0, kind: input, shape index: {}]   ;;  %s4474_s1 = inlined_call_operand.vmem [shape: bf16[4,16,8], index: 1, kind: input, shape index: {}]   ;;  %s4475_s2 = inlined_call_operand.vmem [shape: f32[1,8], index: 2, kind: input, shape index: {}]   ;;  %s4476_s3 = inlined_call_operand.vmem [shape: f32[1,8], index: 3, kind: input, shape index: {}]   ;;  %s4477_s4 = inlined_call_operand.vmem [shape: bf16[9,8,8], index: 4, kind: input, shape index: {}]   ;;  %s4478_s5 = inlined_call_operand.vmem [shape: f32[1,8], index: 5, kind: input, shape index: {}]   ;;  %s4479_s6 = inlined_call_operand.vmem [shape: f32[1,8], index: 6, kind: input, shape index: {}]   ;;  %s4480_s7 = inlined_call_operand.vmem [shape: bf16[4,8], index: 7, kind: input, shape index: {}]   ;;  %s4481_s8 = inlined_call_operand.vmem [shape: f32[1,8], index: 8, kind: input, shape index: {}]   ;;  %s4482_s9 = inlined_call_operand.vmem [shape: f32[1,8], index: 9, kind: input, shape index: {}]   ;;  %s4483_s10 = inlined_call_operand.hbm [shape: f32[2,8,8,8], index: 10, kind: output, shape index: {}]  }
   0x1   :  { %17 = vsyncpa [#allocation4 + $0x1], 0  ;;  %s3526_s13 = smov 0   ;;  %s3528_s14 = smov 0  }
   0x2   :  { %s3530_s15 = smov 0   ;;  %s3532_s16 = smov 0  }
   0x3 LB: > { %s3547_s17 = sadd.s32 4294967295, %s3464_s16   ;;  %s2932_s18 = sadd.s32 4294967294, %s3464_s16   ;;  %s3464_s16 = sphi %s3532_s16, %s4509_s16   ;;  %s3460_s15 = sphi %s3530_s15, %s4508_s15   ;;  %s3456_s14 = sphi %s3528_s14, %s4507_s14   ;;  %s3452_s13 = sphi %s3526_s13, %s4506_s13  }
   0x4   : > { %s3551_s19 = sadd.s32 1, %s3464_s16   ;;  %s245_s20 = sadd.s32 1, %s3460_s15 }
   0x5   : > { %s242_s21 = ssub.s32 %s3464_s16, %s3551_s19  ;;  %p255_p0 = scmp.ne.s32.totalorder %s3460_s15, %s3456_s14 }
   0x6   : > { %p243_p1 = scmp.eq.s32.totalorder %s242_s21, 0  ;;  %p256_p2 = scmp.eq.s32.totalorder %s3547_s17, 1 }
   0x7   : > { %p261_p3 = scmp.ne.s32.totalorder %s3456_s14, %s3452_s13  ;;  %p262_p4 = scmp.eq.s32.totalorder %s2932_s18, 1 }
   0x8   : > { %s3562_s22 = scalar_select %p243_p1, %s3460_s15, %s245_s20  }
   0x9   : > { %p3564_p5 = por %p256_p2, %p255_p0  ;;  %p3568_p6 = por %p262_p4, %p261_p3 }
   0xa   : > { %p2935_p7 = scmp.ge.s32.totalorder %s3464_s16, 1  ;;  %p315_p8 = scmp.lt.s32.totalorder %s3464_s16, 3 }
   0xc   : > { %p316_p9 = pnand %p2935_p7, %p315_p8 }
   0xe   : > { %319 = sbr.rel (%p316_p9) target bundleno = 610 (0x262), region = 60 }
  0x13   : > { %v3380_v0 = vld [vmem:[%s4474_s1] sm:$0xff]   ;;  %p353_p10 = scmp.lt.s32.totalorder %s3547_s17, 1  ;;  %v3381_v1 = vld [vmem:[%s4474_s1 + $0x8] sm:$0xff]   ;;  %v3585_v2 = vld [vmem:[%s4474_s1 + $0x10] sm:$0xff]   ;;  %vm515_vm0 = vcmask 130048   ;;  %s3466_s27 = smov 116  }
  0x14   : > { %3196 = vmatprep.subr.bf16.mxu1 %v3380_v0  ;;  %3186 = vmatprep.subr.bf16.mxu0 %v3381_v1  ;;  %v3385_v3 = vld [vmem:[%s4474_s1 + $0x18] sm:$0xff]   ;;  %vm379_vm1 = vsmask.f32 3328  ;;  %vm380_vm2 = vsmask.f32 7440  ;;  %vm949_vm4 = vcmask 57344  }
  0x15   : > { %s354_s29 = scalar_select %p353_p10, %s3547_s17, 1  ;;  %3197 = vmatpush3.bf16.msra.mxu1 %v3380_v0  ;;  %3187 = vmatpush3.bf16.msra.mxu0 %v3381_v1  ;;  %vm3628_vm3 = vmor %vm379_vm1, %vm380_vm2  ;;  %vm955_vm5 = vsmask.f32 256  ;;  %vm987_vm6 = vsmask.f32 7938  ;;  %vm947_vm7 = vcmask 60416  }
  0x16   : > { %3206 = vmatprep.subr.bf16.mxu0 %v3585_v2  ;;  %3216 = vmatprep.subr.bf16.mxu1 %v3385_v3  ;;  %vm3707_vm8 = vmand %vm949_vm4, %vm955_vm5  ;;  %vm1338_vm11 = vcmask 1043456   ;;  %vm1325_vm12 = vcmask 64512   ;;  %vm1531_vm13 = vcmask 1042432   ;;  %vm1532_vm14 = vcmask 1046532   ;;  %s350_s25 = sand.u32 1, %s3456_s14   ;;  %s3115_s30 = sshll.u32 %s3547_s17, 10 }
  0x17   : > { %s3336_s12 = smul.u32 72, %s354_s29  ;;  %vm3716_vm9 = vmand %vm949_vm4, %vm987_vm6  ;;  %vm2720_vm1 = vcmask 31744   ;;  %s2936_s28 = sshll.u32 %s350_s25, 6 }
  0x18   : > { %vm3738_vm10 = vmand %vm947_vm7, %vm987_vm6  ;;  %s4388_s29 = scalar_lea.vmem [#allocation3], %s2936_s28  ;;  %s4423_s20 = scalar_lea.hbm %s4483_s10, %s3115_s30 }
  0x19   : > { %s3594_s26 = scalar_lea.vmem %s4473_s0, %s3336_s12  ;;  %vm3982_vm15 = vmor %vm1531_vm13, %vm1532_vm14  ;;  %s2870_s11 = sshll.u32 %s4388_s29, 4  ;;  %s4425_s11 = int_to_ptr.vmem [resolvable:$true] %s2870_s11 }
  0x1a   : > { %v359_v4 = vld [vmem:[%s3594_s26] sm:$0xf]  ;;  %v3598_v5 = vld [vmem:[%s3594_s26 + $0x8] sm:$0xf]  ;;  %v3601_v6 = vld [vmem:[%s3594_s26 + $0x10] sm:$0xf] }
  0x1b   : > { %v383_v7 = vshrl.u32 %v359_v4, 16  ;;  %v386_v8 = vshll.u32 %v359_v4, 16  ;;  %v397_v9 = vshrl.u32 %v3598_v5, 16  ;;  %v400_v10 = vshll.u32 %v3598_v5, 16  ;;  %v3606_v11 = vld [vmem:[%s3594_s26 + $0x18] sm:$0xf] }
  0x1c   : > { %v3609_v12 = vcombine.low %v359_v4, %v3598_v5  ;;  %v3613_v13 = vcombine.low %v3601_v6, %v3606_v11  ;;  %v360_v14 = vld [vmem:[%s3594_s26 + $0x4] sm:$0x1]  ;;  %v362_v15 = vld [vmem:[%s3594_s26 + $0xc] sm:$0x1]  ;;  %v364_v16 = vld [vmem:[%s3594_s26 + $0x14] sm:$0x1] }
  0x1d   : > { %v385_v17 = vrot.slane %v383_v7, 4  ;;  %v388_v18 = vrot.slane %v386_v8, 5  ;;  %v392_v19 = vshll.u32 %v360_v14, 16  ;;  %v399_v20 = vrot.slane %v397_v9, 4  ;;  %v366_v23 = vld [vmem:[%s3594_s26 + $0x1c] sm:$0x1] }
  0x1e   : > { %3198 = vmatprep.mubr.msk.bf16.mxu1 %vm515_vm0, %v3609_v12  ;;  %v402_v21 = vrot.slane %v400_v10, 5  ;;  %v406_v22 = vshll.u32 %v362_v15, 16  ;;  %v411_v25 = vshrl.u32 %v3601_v6, 16  ;;  %v414_v26 = vshll.u32 %v3601_v6, 16  ;;  %v3626_v28 = vld [vmem:[%s3594_s26 + $0x20] sm:$0xf]  ;;  %2712 = vrot.lane.b32.xlu0 %v3609_v12, %s3466_s27 }
  0x1f   : > { %3199 = vmatmul.mubr.msk.bf16.vlgmr.msra.gmra.mxu1 %vm515_vm0, %v3613_v13  ;;  %v389_v24 = vor.u32 %v388_v18, %v385_v17  ;;  %v420_v27 = vshll.u32 %v364_v16, 16  ;;  %v394_v30 = vrot.slane %v392_v19, 5  ;;  %v425_v33 = vshrl.u32 %v3606_v11, 16  ;;  %v368_v34 = vld [vmem:[%s3594_s26 + $0x24] sm:$0x1]  ;;  %s4433_s17 = scalar_lea.sflag [#allocation4], %s350_s25 }
  0x20   : > { %v403_v31 = vor.u32 %v402_v21, %v399_v20  ;;  %v408_v32 = vrot.slane %v406_v22, 5  ;;  %3217 = vmatpush3.bf16.msra.mxu1 %v3385_v3  ;;  %v413_v36 = vrot.slane %v411_v25, 4  ;;  %v416_v37 = vrot.slane %v414_v26, 5  ;;  %v3640_v47 = vld [vmem:[%s3594_s26 + $0x28] sm:$0xf]  ;;  %s3404_s21 = scalar_lea.vmem %s4425_s11, 1024 }
  0x21   : > { %v390_v35 = vrot.slane %v389_v24, 4  ;;  %v422_v38 = vrot.slane %v420_v27, 5  ;;  %v427_v40 = vrot.slane %v425_v33, 4  ;;  %v428_v41 = vshll.u32 %v3606_v11, 16  ;;  %v3645_v52 = vld [vmem:[%s3594_s26 + $0x30] sm:$0xf]  ;;  %p3405_p11 = scmp.ne.s32.totalorder %s4425_s11, %s3404_s21 }
  0x22   : > { %v404_v39 = vrot.slane %v403_v31, 4  ;;  %v434_v42 = vshll.u32 %v366_v23, 16  ;;  %v417_v44 = vor.u32 %v416_v37, %v413_v36  ;;  %v439_v45 = vshrl.u32 %v3626_v28, 16  ;;  %v3648_v57 = vld [vmem:[%s3594_s26 + $0x38] sm:$0xf]  ;;  %2714 = vrot.lane.b32.xlu0 %v3613_v13, %s3466_s27 }
  0x23   : > { %v395_v43 = vsel %vm3628_vm3, %v390_v35, %v394_v30  ;;  %v442_v46 = vshll.u32 %v3626_v28, 16  ;;  %v430_v49 = vrot.slane %v428_v41, 5  ;;  %v448_v51 = vshll.u32 %v368_v34, 16  ;;  %v370_v3 = vld [vmem:[%s3594_s26 + $0x2c] sm:$0x1]  ;;  %p3406_p12 = pnand %p3405_p11, %p3564_p5 }
  0x24   : > { %v409_v48 = vsel %vm3628_vm3, %v404_v39, %v408_v32  ;;  %v436_v50 = vrot.slane %v434_v42, 5  ;;  %v418_v53 = vrot.slane %v417_v44, 4  ;;  %v441_v54 = vrot.slane %v439_v45, 4  ;;  %v372_v10 = vld [vmem:[%s3594_s26 + $0x34] sm:$0x1] }
  0x25   : > { %v444_v55 = vrot.slane %v442_v46, 5  ;;  %v2940_v56 = vcombine.low %v395_v43, %v409_v48  ;;  %v431_v58 = vor.u32 %v430_v49, %v427_v40  ;;  %v450_v59 = vrot.slane %v448_v51, 5  ;;  %v374_v21 = vld [vmem:[%s3594_s26 + $0x3c] sm:$0x1]  ;;  %v375_v26 = vld [vmem:[%s3594_s26 + $0x40] sm:$0xf]  ;;  %p3407_p13 = pneg %p3406_p12 }
  0x26   : > { %v453_v60 = vshrl.u32 %v3640_v47, 16  ;;  %v456_v61 = vshll.u32 %v3640_v47, 16  ;;  %v423_v62 = vsel %vm3628_vm3, %v418_v53, %v422_v38  ;;  %v3657_v0 = vcombine.low %v3626_v28, %v3640_v47  ;;  %v376_v33 = vld [vmem:[%s3594_s26 + $0x44] sm:$0x1]  ;;  %s3468_s26 = smov [#allocation3]  }
  0x27   : > { %v445_v63 = vor.u32 %v444_v55, %v441_v54  ;;  %3188 = vmatprep.mubr.msk.bf16.mxu0 %vm515_vm0, %v2940_v56  ;;  %v467_v1 = vshrl.u32 %v3645_v52, 16  ;;  %v432_v4 = vrot.slane %v431_v58, 4  ;;  %v2971_v7 = vcombine.low %v409_v48, %v423_v62 }
  0x28   : > { %v470_v8 = vshll.u32 %v3645_v52, 16  ;;  %v481_v9 = vshrl.u32 %v3648_v57, 16  ;;  %3202 = vmatprep.mubr.msk.bf16.mxu1 %vm515_vm0, %v3657_v0  ;;  %v484_v15 = vshll.u32 %v3648_v57, 16  ;;  %v2952_v16 = vcombine.low %v3645_v52, %v3648_v57  ;;  %2716 = vrot.lane.b32.xlu1 %v3657_v0, %s3466_s27  ;;  %v960_v0 = vld [vmem:[#allocation2 + $0x8] sm:$0x1] }
  0x29   : > { %v446_v14 = vrot.slane %v445_v63, 4  ;;  %v455_v17 = vrot.slane %v453_v60, 4  ;;  %v437_v18 = vsel %vm3628_vm3, %v432_v4, %v436_v50  ;;  %v458_v19 = vrot.slane %v456_v61, 5 }
  0x2a   : > { %v462_v20 = vshll.u32 %v370_v3, 16  ;;  %v469_v22 = vrot.slane %v467_v1, 4  ;;  %v2941_v23 = vcombine.low %v423_v62, %v437_v18  ;;  %3203 = vmatmul.mubr.msk.bf16.gmra.mxu1 %vm515_vm0, %v2952_v16  ;;  %v472_v24 = vrot.slane %v470_v8, 5  ;;  %v992_v1 = vld [vmem:[#allocation2 + $0xc] sm:$0x1] }
  0x2b   : > { %v476_v25 = vshll.u32 %v372_v10, 16  ;;  %v451_v27 = vsel %vm3628_vm3, %v446_v14, %v450_v59  ;;  %v459_v30 = vor.u32 %v458_v19, %v455_v17  ;;  %v483_v32 = vrot.slane %v481_v9, 4  ;;  %3218 = vmatprep.mubr.msk.bf16.mxu1 %vm515_vm0, %v2971_v7  ;;  %v969_v7 = vld [vmem:[#allocation2 + $0x20] sm:$0x1]  ;;  %v1001_v8 = vld [vmem:[#allocation2 + $0x24] sm:$0x1] }
  0x2c   : > { %v464_v31 = vrot.slane %v462_v20, 5  ;;  %3189 = vmatmul.mubr.msk.bf16.vlgmr.msra.gmra.mxu0 %vm515_vm0, %v2941_v23  ;;  %v473_v34 = vor.u32 %v472_v24, %v469_v22  ;;  %v486_v36 = vrot.slane %v484_v15, 5  ;;  %v490_v37 = vshll.u32 %v374_v21, 16  ;;  %2718 = vrot.lane.b32.xlu1 %v2952_v16, %s3466_s27  ;;  %v963_v14 = vld [vmem:[#allocation2 + $0x10] sm:$0x1]  ;;  %s3408_s27 = sshll.u32 %s3468_s26, 4  ;;  %s3409_s27 = int_to_ptr.vmem [resolvable:$false] %s3408_s27 }
  0x2d   : > { %v478_v35 = vrot.slane %v476_v25, 5  ;;  %v2972_v38 = vcombine.low %v437_v18, %v451_v27  ;;  %3207 = vmatpush3.bf16.msra.mxu0 %v3585_v2  ;;  %v460_v39 = vrot.slane %v459_v30, 4  ;;  %v797_v40 = vshrl.u32 %v375_v26, 16  ;;  %v995_v15 = vld [vmem:[#allocation2 + $0x14] sm:$0x1]  ;;  %s3410_s28 = scalar_lea.vmem %s3409_s27, 2048  ;;  %p3411_p0 = scmp.lt.s32.totalorder %s4425_s11, %s3409_s27 }
  0x2e   : > { %v800_v41 = vshll.u32 %v375_v26, 16  ;;  %v474_v42 = vrot.slane %v473_v34, 4  ;;  %v487_v43 = vor.u32 %v486_v36, %v483_v32  ;;  %v492_v44 = vrot.slane %v490_v37, 5  ;;  %v972_v32 = vld [vmem:[#allocation2 + $0x28] sm:$0x1]  ;;  %p3412_p1 = scmp.lt.s32.totalorder %s3410_s28, %s3404_s21 }
  0x2f   : > { %v806_v45 = vshll.u32 %v376_v33, 16  ;;  %v465_v46 = vsel %vm3628_vm3, %v460_v39, %v464_v31  ;;  %v799_v48 = vrot.slane %v797_v40, 4  ;;  %v2960_v58 = vcombine.low %v3598_v5, %v3601_v6  ;;  %v1010_v31 = vld [vmem:[#allocation2 + $0x3c] sm:$0x1]  ;;  %v981_v37 = vld [vmem:[#allocation2 + $0x40] sm:$0x1] }
  0x30   : > { %v802_v49 = vrot.slane %v800_v41, 5  ;;  %v2942_v50 = vcombine.low %v451_v27, %v465_v46  ;;  %v479_v51 = vsel %vm3628_vm3, %v474_v42, %v478_v35  ;;  %v488_v53 = vrot.slane %v487_v43, 4  ;;  %v978_v27 = vld [vmem:[#allocation2 + $0x38] sm:$0x1]  ;;  %v1004_v35 = vld [vmem:[#allocation2 + $0x2c] sm:$0x1]  ;;  %p3413_p2 = por %p3412_p1, %p3411_p0 }
  0x31   : > { %v2973_v54 = vcombine.low %v465_v46, %v479_v51  ;;  %v808_v2 = vrot.slane %v806_v45, 5  ;;  %v2961_v63 = vcombine.low %v3606_v11, %v3626_v28  ;;  %v2962_v5 = vcombine.low %v3640_v47, %v3645_v52  ;;  %v966_v28 = vld [vmem:[#allocation2 + $0x18] sm:$0x1]  ;;  %v998_v47 = vld [vmem:[#allocation2 + $0x1c] sm:$0x1] }
  0x32   : > { %v803_v55 = vor.u32 %v802_v49, %v799_v48  ;;  %3192 = vmatprep.mubr.msk.bf16.mxu0 %vm515_vm0, %v2942_v50  ;;  %v493_v56 = vsel %vm3628_vm3, %v488_v53, %v492_v44  ;;  %3219 = vmatmul.mubr.msk.bf16.vlgmr.msra.gmra.mxu1 %vm515_vm0, %v2972_v38  ;;  %v2963_v6 = vcombine.low %v3648_v57, %v375_v26  ;;  %v3467_v52 = vmov 0   ;;  %v1013_v38 = vld [vmem:[#allocation2 + $0x44] sm:$0x1]  ;;  %v975_v41 = vld [vmem:[#allocation2 + $0x30] sm:$0x1]  ;;  %p3414_p3 = pnand %p3413_p2, %p3407_p13 }
  0x33   : > { %v2943_v59 = vcombine.low %v479_v51, %v493_v56  ;;  %3222 = vmatprep.mubr.msk.bf16.mxu1 %vm515_vm0, %v2973_v54  ;;  %948 = vst.msk [vmem:[#allocation2] sm:$0xf] %vm947_vm7, %v3467_v52  ;;  %952 = vst.msk [vmem:[#allocation2 + $0x48] sm:$0xf] %vm947_vm7, %v3467_v52  ;;  %v967_v12 = vsel %vm3707_vm8, 0, %v966_v28  ;;  %v999_v57 = vsel %vm3716_vm9, 0, %v998_v47 }
  0x34   : > { %v804_v60 = vrot.slane %v803_v55, 4  ;;  %950 = vst.msk [vmem:[#allocation2 + $0x4] sm:$0x1] %vm949_vm4, %v3467_v52  ;;  %953 = vst.msk [vmem:[#allocation2 + $0x4c] sm:$0x1] %vm949_vm4, %v3467_v52  ;;  %v961_v3 = vsel %vm3707_vm8, 0, %v960_v0 }
  0x35   : > { %3193 = vmatmul.mubr.msk.bf16.gmra.mxu0 %vm515_vm0, %v2943_v59  ;;  %968 = vst [vmem:[#allocation2 + $0x18] sm:$0x1] %v967_v12  ;;  %1000 = vst [vmem:[#allocation2 + $0x1c] sm:$0x1] %v999_v57  ;;  %v993_v4 = vsel %vm3716_vm9, 0, %v992_v1  ;;  %v970_v9 = vsel %vm3707_vm8, 0, %v969_v7 }
  0x36   : > { %v809_v61 = vsel %vm3628_vm3, %v804_v60, %v808_v2  ;;  %3208 = vmatprep.mubr.msk.bf16.mxu0 %vm515_vm0, %v2960_v58  ;;  %962 = vst [vmem:[#allocation2 + $0x8] sm:$0x1] %v961_v3  ;;  %994 = vst [vmem:[#allocation2 + $0xc] sm:$0x1] %v993_v4  ;;  %v1002_v10 = vsel %vm3716_vm9, 0, %v1001_v8  ;;  %v964_v24 = vsel %vm3707_vm8, 0, %v963_v14 }
  0x37   : > { %v2974_v62 = vcombine.low %v493_v56, %v809_v61  ;;  %971 = vst [vmem:[#allocation2 + $0x20] sm:$0x1] %v970_v9  ;;  %1003 = vst [vmem:[#allocation2 + $0x24] sm:$0x1] %v1002_v10  ;;  %v996_v26 = vsel %vm3716_vm9, 0, %v995_v15  ;;  %v979_v30 = vsel %vm3707_vm8, 0, %v978_v27 }
  0x38   : > { %965 = vst [vmem:[#allocation2 + $0x10] sm:$0x1] %v964_v24  ;;  %997 = vst [vmem:[#allocation2 + $0x14] sm:$0x1] %v996_v26  ;;  %v1011_v33 = vsel %vm3716_vm9, 0, %v1010_v31  ;;  %v973_v34 = vsel %vm3707_vm8, 0, %v972_v32 }
  0x39   : > { %980 = vst [vmem:[#allocation2 + $0x38] sm:$0x1] %v979_v30  ;;  %1012 = vst [vmem:[#allocation2 + $0x3c] sm:$0x1] %v1011_v33  ;;  %v1005_v36 = vsel %vm3716_vm9, 0, %v1004_v35  ;;  %v982_v39 = vsel %vm3707_vm8, 0, %v981_v37 }
  0x3a   : > { %3223 = vmatmul.mubr.msk.bf16.gmra.mxu1 %vm515_vm0, %v2974_v62  ;;  %v957_v16 = vld [vmem:[#allocation2] sm:$0x1]  ;;  %v984_v17 = vld [vmem:[#allocation2 + $0x48] sm:$0x1]  ;;  %974 = vst [vmem:[#allocation2 + $0x28] sm:$0x1] %v973_v34 }
  0x3b   : > { %v989_v18 = vld [vmem:[#allocation2 + $0x4] sm:$0x1]  ;;  %v958_v19 = vsel %vm3707_vm8, 0, %v957_v16  ;;  %v985_v20 = vsel %vm3707_vm8, 0, %v984_v17  ;;  %v1016_v22 = vld [vmem:[#allocation2 + $0x4c] sm:$0x1] }
  0x3c   : > { %v990_v21 = vsel %vm3716_vm9, 0, %v989_v18  ;;  %959 = vst [vmem:[#allocation2] sm:$0x1] %v958_v19  ;;  %986 = vst [vmem:[#allocation2 + $0x48] sm:$0x1] %v985_v20  ;;  %v1017_v25 = vsel %vm3716_vm9, 0, %v1016_v22 }
  0x3d   : > { %3209 = vmatmul.mubr.msk.bf16.vlgmr.msra.gmra.mxu0 %vm515_vm0, %v2961_v63  ;;  %991 = vst [vmem:[#allocation2 + $0x4] sm:$0x1] %v990_v21  ;;  %1018 = vst [vmem:[#allocation2 + $0x4c] sm:$0x1] %v1017_v25  ;;  %v1014_v40 = vsel %vm3716_vm9, 0, %v1013_v38  ;;  %v976_v43 = vsel %vm3707_vm8, 0, %v975_v41 }
  0x3e   : > { %3212 = vmatprep.mubr.msk.bf16.mxu0 %vm515_vm0, %v2962_v5  ;;  %1006 = vst [vmem:[#allocation2 + $0x2c] sm:$0x1] %v1005_v36  ;;  %983 = vst [vmem:[#allocation2 + $0x40] sm:$0x1] %v982_v39  ;;  %v1007_v42 = vld [vmem:[#allocation2 + $0x34] sm:$0x1] }
  0x3f   : > { %1015 = vst [vmem:[#allocation2 + $0x44] sm:$0x1] %v1014_v40  ;;  %v1008_v44 = vsel %vm3716_vm9, 0, %v1007_v42  ;;  %977 = vst [vmem:[#allocation2 + $0x30] sm:$0x1] %v976_v43 }
  0x40   : > { %1009 = vst [vmem:[#allocation2 + $0x34] sm:$0x1] %v1008_v44  ;;  %v1190_v45 = vld [vmem:[%s4477_s4] sm:$0xf]  ;;  %v2990_v48 = vld [vmem:[%s4477_s4 + $0x4] sm:$0xf] }
  0x41   : > { %3327 = vmatprep.subr.msk.bf16.mxu1 %vm1338_vm11, %v1190_v45  ;;  %v1440_v46 = vsel %vm1338_vm11, %v1190_v45, 0  ;;  %3326 = vmatprep.subr.msk.bf16.mxu0 %vm1338_vm11, %v2990_v48  ;;  %v1340_v49 = vsel %vm1338_vm11, %v2990_v48, 0  ;;  %v3015_v50 = vld [vmem:[%s4477_s4 + $0x8] sm:$0xf]  ;;  %v3024_v51 = vld [vmem:[%s4477_s4 + $0xc] sm:$0xf] }
  0x42   : > { %3237 = vmatpush3.bf16.msra.mxu1 %v1440_v46  ;;  %3227 = vmatpush3.bf16.msra.mxu0 %v1340_v49  ;;  %v3799_v20 = vld [vmem:[#allocation2] sm:$0xe]  ;;  %v3804_v21 = vld [vmem:[%s4475_s2] ss:$0 sm:$0xff]  ;;  %v3809_v30 = vld [vmem:[%s4477_s4 + $0x10] sm:$0xf] }
  0x43   : > { %3328 = vmatprep.subr.msk.bf16.mxu0 %vm1338_vm11, %v3015_v50  ;;  %3329 = vmatprep.subr.msk.bf16.mxu1 %vm1338_vm11, %v3024_v51  ;;  %v3786_v62 = vld [vmem:[#allocation2] sm:$0xf]  ;;  %v2307_v31 = vld [vmem:[#allocation2 + $0x48] sm:$0xf]  ;;  %v3821_v35 = vsel %vm1338_vm11, %v3015_v50, 0  ;;  %v3007_v36 = vrot.slane %v3799_v20, 9 }
  0x44   : > { %v1203_v28 = vshll.u32 %v3786_v62, 16  ;;  %v3792_v3 = vld [vmem:[#allocation2 + $0x4] sm:$0x1]  ;;  %v3814_v32 = vld [vmem:[%s4476_s3] ss:$0 sm:$0xff]  ;;  %v3842_v46 = vsel %vm1338_vm11, %v3024_v51, 0 }
  0x45   : > { %3213 = vmatmul.mubr.msk.bf16.gmra.mxu0 %vm515_vm0, %v2963_v6  ;;  %v1200_v6 = vshrl.u32 %v3786_v62, 16  ;;  %v1209_v8 = vshll.u32 %v3792_v3, 16  ;;  %v1536_v37 = vrot.slane %v3792_v3, 5  ;;  %v3829_v42 = vld [vmem:[%s4477_s4 + $0x14] sm:$0xf]  ;;  %v3846_v48 = vsel %vm1338_vm11, %v3809_v30, 0 }
  0x46   : > { %v1205_v57 = vrot.slane %v1203_v28, 5  ;;  %v3834_v43 = vld [vmem:[%s4477_s4 + $0x18] sm:$0xf]  ;;  %v3839_v44 = vld [vmem:[%s4477_s4 + $0x1c] sm:$0xf]  ;;  %v2408_v49 = vshrl.u32 %v2307_v31, 16 }
  0x47   : > { %v1202_v13 = vrot.slane %v1200_v6, 4  ;;  %v3797_v17 = vrot.slane %v1209_v8, 5  ;;  %v2411_v50 = vshll.u32 %v2307_v31, 16  ;;  %v3852_v6 = vsel %vm1338_vm11, %v3829_v42, 0 }
  0x48   : > { %v3856_v51 = vsel %vm1338_vm11, %v3834_v43, 0  ;;  %v3860_v28 = vsel %vm1338_vm11, %v3839_v44, 0  ;;  %vm2733_vm0 = vcmask 1041408  }
  0x49   : > { %v1206_v7 = vor.u32 %v1205_v57, %v1202_v13  ;;  %v3867_v8 = vrot.slane %v2411_v50, 5 }
  0x4b   : > { %v3795_v16 = vrot.slane %v1206_v7, 4  ;;  %v3865_v7 = vrot.slane %v2408_v49, 4 }
  0x4d   : > { %v1212_v34 = vsel %vm3628_vm3, %v3795_v16, %v3797_v17 }
  0xdf   : > { %v3200_v53 = vpop.f32.mrf.mxu1 }
  0xe1   : > { %v665_v54 = vpop.f32.mrf.mxu1 }
  0xe3   : > { %v3201_v55 = vpop.f32.mrf.mxu1 }
  0xe5   : > { %v668_v2 = vpop.f32.mrf.mxu1 }
  0xea   : > { %v3204_v56 = vpop.f32.mrf.mxu1 }
  0xec   : > { %v3190_v58 = vpop.f32.mrf.mxu0  ;;  %v3782_v59 = vpop.f32.mrf.mxu1 }
  0xed   : > { %v674_v10 = vadd.f32 %v3200_v53, %v3190_v58 }
  0xee   : > { %v562_v60 = vpop.f32.mrf.mxu0  ;;  %v3784_v61 = vpop.f32.mrf.mxu1 }
  0xef   : > { %v666_v18 = vadd.f32 %v665_v54, %v562_v60 }
  0xf0   : > { %v3191_v63 = vpop.f32.mrf.mxu0  ;;  %v3788_v5 = vpop.f32.mrf.mxu1 }
  0xf1   : > { %v677_v24 = vadd.f32 %v3201_v55, %v3191_v63 }
  0xf2   : > { %v565_v47 = vpop.f32.mrf.mxu0  ;;  %v3220_v52 = vpop.f32.mrf.mxu1 }
  0xf3   : > { %v669_v38 = vadd.f32 %v668_v2, %v565_v47 }
  0xf4   : > { %v870_v1 = vpop.f32.mrf.mxu1 }
  0xf5   : > { %v3194_v12 = vpop.f32.mrf.mxu0 }
  0xf6   : > { %v3221_v14 = vpop.f32.mrf.mxu1  ;;  %v690_v60 = vadd.f32 %v3204_v56, %v3194_v12 }
  0xf7   : > { %v578_v0 = vpop.f32.mrf.mxu0 }
  0xf8   : > { %v873_v27 = vpop.f32.mrf.mxu1  ;;  %v682_v56 = vadd.f32 %v3782_v59, %v578_v0 }
  0xf9   : > { %v3195_v4 = vpop.f32.mrf.mxu0 }
  0xfa   : > { %v3224_v2 = vpop.f32.mrf.mxu1 }
  0xfb   : > { %v581_v9 = vpop.f32.mrf.mxu0 }
  0xfd   : > { %v3210_v15 = vpop.f32.mrf.mxu0 }
  0xfe   : > { %v790_v19 = vadd.f32 %v3210_v15, %v674_v10 }
  0xff   : > { %v757_v22 = vpop.f32.mrf.mxu0 }
 0x100   : > { %v903_v25 = vadd.f32 %v3220_v52, %v790_v19  ;;  %v788_v26 = vadd.f32 %v757_v22, %v666_v18  ;;  %v886_v19 = vpop.f32.mrf.mxu1  ;;  %v693_v22 = vadd.f32 %v3784_v61, %v3195_v4  ;;  %v1146_v4 = vld [vmem:[#allocation2 + $0x18] sm:$0xf] }
 0x101   : > { %v3211_v33 = vpop.f32.mrf.mxu0 }
 0x102   : > { %v918_v39 = vmul.f32 %v3804_v21, %v903_v25  ;;  %v901_v40 = vadd.f32 %v870_v1, %v788_v26  ;;  %v791_v41 = vadd.f32 %v3211_v33, %v677_v24  ;;  %v685_v24 = vadd.f32 %v3788_v5, %v581_v9  ;;  %v3225_v61 = vpop.f32.mrf.mxu1  ;;  %v1149_v5 = vld [vmem:[#allocation2 + $0x1c] sm:$0x1] }
 0x103   : > { %v760_v45 = vpop.f32.mrf.mxu0 }
 0x104   : > { %v933_v53 = vadd.f32 %v3814_v32, %v918_v39  ;;  %v916_v54 = vmul.f32 %v3804_v21, %v901_v40  ;;  %v904_v55 = vadd.f32 %v3221_v14, %v791_v41  ;;  %v789_v58 = vadd.f32 %v760_v45, %v669_v38 }
 0x105   : > { %v3214_v63 = vpop.f32.mrf.mxu0 }
 0x106   : > { %v941_v47 = vmax.f32 %v933_v53, 0.0  ;;  %v931_v52 = vadd.f32 %v3814_v32, %v916_v54  ;;  %v919_v13 = vmul.f32 %v3804_v21, %v904_v55  ;;  %v902_v57 = vadd.f32 %v873_v27, %v789_v58 }
 0x107   : > { %v794_v12 = vadd.f32 %v3214_v63, %v690_v60  ;;  %v773_v1 = vpop.f32.mrf.mxu0 }
 0x108   : > { %v3109_v10 = vpack.c.bf16 %v941_v47, %v941_v47  ;;  %v939_v14 = vmax.f32 %v931_v52, 0.0  ;;  %v934_v15 = vadd.f32 %v3814_v32, %v919_v13  ;;  %v917_v18 = vmul.f32 %v3804_v21, %v902_v57  ;;  %v1134_v52 = vld [vmem:[#allocation2 + $0x8] sm:$0xf]  ;;  %v1137_v13 = vld [vmem:[#allocation2 + $0xc] sm:$0x1] }
 0x109   : > { %v907_v25 = vadd.f32 %v3224_v2, %v794_v12  ;;  %v792_v26 = vadd.f32 %v773_v1, %v682_v56  ;;  %v3215_v59 = vpop.f32.mrf.mxu0 }
 0x10a   : > { %v1068_v0 = vshrl.u32 %v3109_v10, 16  ;;  %v1071_v27 = vshll.u32 %v3109_v10, 16  ;;  %v3107_v31 = vpack.c.bf16 %v939_v14, %v939_v14  ;;  %v942_v33 = vmax.f32 %v934_v15, 0.0 }
 0x10b   : > { %v932_v38 = vadd.f32 %v3814_v32, %v917_v18  ;;  %v922_v39 = vmul.f32 %v3804_v21, %v907_v25  ;;  %v905_v40 = vadd.f32 %v886_v19, %v792_v26  ;;  %v795_v41 = vadd.f32 %v3215_v59, %v693_v22  ;;  %v776_v59 = vpop.f32.mrf.mxu0 }
 0x10c   : > { %v1070_v45 = vrot.slane %v1068_v0, 7  ;;  %v1052_v49 = vshrl.u32 %v3107_v31, 16  ;;  %v1055_v50 = vshll.u32 %v3107_v31, 16  ;;  %v3110_v53 = vpack.c.bf16 %v942_v33, %v942_v33  ;;  %v1152_v31 = vld [vmem:[#allocation2 + $0x20] sm:$0xf] }
 0x10d   : > { %v940_v9 = vmax.f32 %v932_v38, 0.0  ;;  %v937_v54 = vadd.f32 %v3814_v32, %v922_v39  ;;  %v920_v55 = vmul.f32 %v3804_v21, %v905_v40  ;;  %v908_v2 = vadd.f32 %v3225_v61, %v795_v41  ;;  %v1155_v33 = vld [vmem:[#allocation2 + $0x24] sm:$0x1] }
 0x10e   : > { %v1073_v58 = vor.u32 %v1071_v27, %v1070_v45  ;;  %v1074_v60 = vrot.slane %v1070_v45, 4  ;;  %v1054_v63 = vrot.slane %v1052_v49, 7  ;;  %v1076_v47 = vshrl.u32 %v3110_v53, 16 }
 0x10f   : > { %v1079_v57 = vshll.u32 %v3110_v53, 16  ;;  %v3108_v56 = vpack.c.bf16 %v940_v9, %v940_v9  ;;  %v945_v12 = vmax.f32 %v937_v54, 0.0  ;;  %v935_v1 = vadd.f32 %v3814_v32, %v920_v55  ;;  %v1143_v53 = vld [vmem:[#allocation2 + $0x14] sm:$0x1] }
 0x110   : > { %v1147_v10 = vsel %vm3738_vm10, %v1073_v58, %v1146_v4  ;;  %v1150_v14 = vsel %vm3707_vm8, %v1074_v60, %v1149_v5  ;;  %v1057_v15 = vor.u32 %v1055_v50, %v1054_v63  ;;  %v1058_v18 = vrot.slane %v1054_v63, 4  ;;  %v1140_v50 = vld [vmem:[#allocation2 + $0x10] sm:$0xf]  ;;  %v1170_v60 = vld [vmem:[#allocation2 + $0x38] sm:$0xf] }
 0x111   : > { %1148 = vst [vmem:[#allocation2 + $0x18] sm:$0xf] %v1147_v10  ;;  %1151 = vst [vmem:[#allocation2 + $0x1c] sm:$0x1] %v1150_v14  ;;  %v1078_v19 = vrot.slane %v1076_v47, 7  ;;  %v1060_v22 = vshrl.u32 %v3108_v56, 16  ;;  %v3113_v26 = vpack.c.bf16 %v945_v12, %v945_v12  ;;  %v923_v39 = vmul.f32 %v3804_v21, %v908_v2 }
 0x112   : > { %v1063_v25 = vshll.u32 %v3108_v56, 16  ;;  %v1135_v0 = vsel %vm3738_vm10, %v1057_v15, %v1134_v52  ;;  %v1138_v27 = vsel %vm3707_vm8, %v1058_v18, %v1137_v13  ;;  %v943_v38 = vmax.f32 %v935_v1, 0.0  ;;  %v1173_v52 = vld [vmem:[#allocation2 + $0x3c] sm:$0x1]  ;;  %v1158_v10 = vld [vmem:[#allocation2 + $0x28] sm:$0xf] }
 0x113   : > { %1136 = vst [vmem:[#allocation2 + $0x8] sm:$0xf] %v1135_v0  ;;  %1139 = vst [vmem:[#allocation2 + $0xc] sm:$0x1] %v1138_v27  ;;  %v1081_v40 = vor.u32 %v1079_v57, %v1078_v19  ;;  %v1082_v41 = vrot.slane %v1078_v19, 4  ;;  %v1062_v45 = vrot.slane %v1060_v22, 7  ;;  %v938_v4 = vadd.f32 %v3814_v32, %v923_v39  ;;  %v889_v57 = vpop.f32.mrf.mxu1 }
 0x114   : > { %v1100_v49 = vshrl.u32 %v3113_v26, 16  ;;  %v3111_v61 = vpack.c.bf16 %v943_v38, %v943_v38  ;;  %v793_v5 = vadd.f32 %v776_v59, %v685_v24  ;;  %v2414_v9 = vor.u32 %v3867_v8, %v3865_v7  ;;  %v1161_v14 = vld [vmem:[#allocation2 + $0x2c] sm:$0x1] }
 0x115   : > { %v1153_v54 = vsel %vm3738_vm10, %v1081_v40, %v1152_v31  ;;  %v1156_v55 = vsel %vm3707_vm8, %v1082_v41, %v1155_v33  ;;  %v1065_v2 = vor.u32 %v1063_v25, %v1062_v45  ;;  %v1066_v58 = vrot.slane %v1062_v45, 4 }
 0x116   : > { %1154 = vst [vmem:[#allocation2 + $0x20] sm:$0xf] %v1153_v54  ;;  %1157 = vst [vmem:[#allocation2 + $0x24] sm:$0x1] %v1156_v55  ;;  %v1102_v63 = vrot.slane %v1100_v49, 7  ;;  %v1103_v47 = vshll.u32 %v3113_v26, 16  ;;  %v906_v15 = vadd.f32 %v889_v57, %v793_v5 }
 0x117   : > { %v1084_v13 = vshrl.u32 %v3111_v61, 16  ;;  %v946_v24 = vmax.f32 %v938_v4, 0.0  ;;  %v1141_v56 = vsel %vm3738_vm10, %v1065_v2, %v1140_v50  ;;  %v1144_v12 = vsel %vm3707_vm8, %v1066_v58, %v1143_v53  ;;  %v1176_v5 = vld [vmem:[#allocation2 + $0x40] sm:$0xf] }
 0x118   : > { %v1087_v1 = vshll.u32 %v3111_v61, 16  ;;  %1142 = vst [vmem:[#allocation2 + $0x10] sm:$0xf] %v1141_v56  ;;  %1145 = vst [vmem:[#allocation2 + $0x14] sm:$0x1] %v1144_v12  ;;  %v1105_v18 = vor.u32 %v1103_v47, %v1102_v63  ;;  %v1106_v19 = vrot.slane %v1102_v63, 4  ;;  %v921_v0 = vmul.f32 %v3804_v21, %v906_v15 }
 0x119   : > { %v1086_v22 = vrot.slane %v1084_v13, 7  ;;  %v3114_v25 = vpack.c.bf16 %v946_v24, %v946_v24  ;;  %v1185_v26 = vld [vmem:[#allocation2 + $0x18] sm:$0xf]  ;;  %v3898_v59 = vld [vmem:[#allocation2 + $0x1c] sm:$0x1] }
 0x11a   : > { %v1242_v27 = vshrl.u32 %v1185_v26, 16  ;;  %v1245_v31 = vshll.u32 %v1185_v26, 16  ;;  %v1251_v33 = vshll.u32 %v3898_v59, 16  ;;  %v1171_v38 = vsel %vm3738_vm10, %v1105_v18, %v1170_v60  ;;  %v1183_v45 = vld [vmem:[#allocation2 + $0x8] sm:$0xf] }
 0x11b   : > { %v1174_v39 = vsel %vm3707_vm8, %v1106_v19, %v1173_v52  ;;  %v1089_v40 = vor.u32 %v1087_v1, %v1086_v22  ;;  %v1090_v41 = vrot.slane %v1086_v22, 4  ;;  %1172 = vst [vmem:[#allocation2 + $0x38] sm:$0xf] %v1171_v38  ;;  %v1108_v49 = vshrl.u32 %v3114_v25, 16  ;;  %v3912_v2 = vld [vmem:[#allocation2 + $0xc] sm:$0x1] }
 0x11c   : > { %1175 = vst [vmem:[#allocation2 + $0x3c] sm:$0x1] %v1174_v39  ;;  %v1111_v50 = vshll.u32 %v3114_v25, 16  ;;  %v936_v53 = vadd.f32 %v3814_v32, %v921_v0  ;;  %v1214_v21 = vshrl.u32 %v1183_v45, 16  ;;  %v1217_v54 = vshll.u32 %v1183_v45, 16 }
 0x11d   : > { %v1159_v61 = vsel %vm3738_vm10, %v1089_v40, %v1158_v10  ;;  %v1162_v4 = vsel %vm3707_vm8, %v1090_v41, %v1161_v14  ;;  %v2999_v55 = vcombine.low %v3786_v62, %v1183_v45  ;;  %v1110_v58 = vrot.slane %v1108_v49, 7  ;;  %v1186_v32 = vld [vmem:[#allocation2 + $0x20] sm:$0xf]  ;;  %v1179_v52 = vld [vmem:[#allocation2 + $0x44] sm:$0x1] }
 0x11e   : > { %1160 = vst [vmem:[#allocation2 + $0x28] sm:$0xf] %v1159_v61  ;;  %1163 = vst [vmem:[#allocation2 + $0x2c] sm:$0x1] %v1162_v4  ;;  %v944_v60 = vmax.f32 %v936_v53, 0.0  ;;  %v1216_v63 = vrot.slane %v1214_v21, 4 }
 0x11f   : > { %v3914_v47 = vrot.slane %v1242_v27, 4  ;;  %v1219_v13 = vrot.slane %v1217_v54, 5  ;;  %3238 = vmatprep.mubr.msk.bf16.mxu1 %vm1325_vm12, %v2999_v55  ;;  %v1247_v57 = vrot.slane %v1245_v31, 5  ;;  %v1256_v24 = vshrl.u32 %v1186_v32, 16  ;;  %v1184_v10 = vld [vmem:[#allocation2 + $0x10] sm:$0xf] }
 0x120   : > { %v1259_v56 = vshll.u32 %v1186_v32, 16  ;;  %v1113_v12 = vor.u32 %v1111_v50, %v1110_v58  ;;  %v1114_v1 = vrot.slane %v1110_v58, 4  ;;  %v3112_v62 = vpack.c.bf16 %v944_v60, %v944_v60  ;;  %v3924_v38 = vld [vmem:[#allocation2 + $0x14] sm:$0x1]  ;;  %v1164_v50 = vld [vmem:[#allocation2 + $0x30] sm:$0xf] }
 0x121   : > { %v1223_v14 = vshll.u32 %v3912_v2, 16  ;;  %v1228_v15 = vshrl.u32 %v1184_v10, 16  ;;  %v1231_v18 = vshll.u32 %v1184_v10, 16  ;;  %v3000_v19 = vcombine.low %v1184_v10, %v1185_v26  ;;  %v1167_v4 = vld [vmem:[#allocation2 + $0x34] sm:$0x1] }
 0x122   : > { %v3918_v22 = vrot.slane %v1256_v24, 4  ;;  %v1177_v25 = vsel %vm3738_vm10, %v1113_v12, %v1176_v5  ;;  %v1180_v0 = vsel %vm3707_vm8, %v1114_v1, %v1179_v52  ;;  %v1092_v27 = vshrl.u32 %v3112_v62, 16  ;;  %v3927_v45 = vld [vmem:[#allocation2 + $0x38] sm:$0xf]  ;;  %v1511_v3 = vld [vmem:[#allocation2 + $0x20] sm:$0xe] }
 0x123   : > { %v1095_v31 = vshll.u32 %v3112_v62, 16  ;;  %1178 = vst [vmem:[#allocation2 + $0x40] sm:$0xf] %v1177_v25  ;;  %1181 = vst [vmem:[#allocation2 + $0x44] sm:$0x1] %v1180_v0  ;;  %v1230_v39 = vrot.slane %v1228_v15, 4  ;;  %3239 = vmatmul.mubr.msk.bf16.vlgmr.msra.gmra.mxu1 %vm1325_vm12, %v3000_v19  ;;  %v1220_v26 = vor.u32 %v1219_v13, %v1216_v63  ;;  %v1248_v60 = vor.u32 %v1247_v57, %v3914_v47 }
 0x124   : > { %v1233_v40 = vrot.slane %v1231_v18, 5  ;;  %v1261_v41 = vrot.slane %v1259_v56, 5  ;;  %v1094_v49 = vrot.slane %v1092_v27, 7  ;;  %v1225_v53 = vrot.slane %v1223_v14, 5  ;;  %3257 = vmatpush3.bf16.msra.mxu1 %v3842_v46  ;;  %v3936_v56 = vld [vmem:[#allocation2 + $0x24] sm:$0x1] }
 0x125   : > { %v1298_v21 = vshrl.u32 %v3927_v45, 16  ;;  %v1301_v61 = vshll.u32 %v3927_v45, 16  ;;  %v1187_v5 = vld [vmem:[#allocation2 + $0x28] sm:$0xf]  ;;  %v1221_v54 = vrot.slane %v1220_v26, 4  ;;  %v1237_v58 = vshll.u32 %v3924_v38, 16  ;;  %3331 = vmatprep.subr.msk.bf16.mxu1 %vm1338_vm11, %v3829_v42 }
 0x126   : > { %v1234_v55 = vor.u32 %v1233_v40, %v1230_v39  ;;  %v1097_v63 = vor.u32 %v1095_v31, %v1094_v49  ;;  %v1098_v52 = vrot.slane %v1094_v49, 4  ;;  %v1270_v13 = vshrl.u32 %v1187_v5, 16  ;;  %v3944_v14 = vld [vmem:[#allocation2 + $0x2c] sm:$0x1]  ;;  %v3946_v15 = vld [vmem:[#allocation2 + $0x3c] sm:$0x1] }
 0x127   : > { %v1273_v24 = vshll.u32 %v1187_v5, 16  ;;  %v3001_v46 = vcombine.low %v1186_v32, %v1187_v5  ;;  %v1226_v12 = vsel %vm3628_vm3, %v1221_v54, %v1225_v53  ;;  %v1300_v1 = vrot.slane %v1298_v21, 4  ;;  %v3958_v31 = vld [vmem:[#allocation2 + $0x4c] sm:$0x1]  ;;  %v1508_v40 = vld [vmem:[#allocation2 + $0x8] sm:$0xe] }
 0x128   : > { %v1303_v62 = vrot.slane %v1301_v61, 5  ;;  %v1165_v10 = vsel %vm3738_vm10, %v1097_v63, %v1164_v50  ;;  %v1168_v47 = vsel %vm3707_vm8, %v1098_v52, %v1167_v4  ;;  %v1272_v57 = vrot.slane %v1270_v13, 4  ;;  %v1509_v26 = vld [vmem:[#allocation2 + $0x10] sm:$0xe]  ;;  %v1510_v49 = vld [vmem:[#allocation2 + $0x18] sm:$0xe] }
 0x129   : > { %v1275_v42 = vrot.slane %v1273_v24, 5  ;;  %1166 = vst [vmem:[#allocation2 + $0x30] sm:$0xf] %v1165_v10  ;;  %1169 = vst [vmem:[#allocation2 + $0x34] sm:$0x1] %v1168_v47  ;;  %3242 = vmatprep.mubr.msk.bf16.mxu1 %vm1325_vm12, %v3001_v46  ;;  %v2991_v23 = vcombine.low %v1212_v34, %v1226_v12  ;;  %v1235_v32 = vrot.slane %v1234_v55, 4  ;;  %v1262_v25 = vor.u32 %v1261_v41, %v3918_v22 }
 0x12a   : > { %v1239_v18 = vrot.slane %v1237_v58, 5  ;;  %v1249_v11 = vrot.slane %v1248_v60, 4  ;;  %v1253_v19 = vrot.slane %v1251_v33, 5  ;;  %v1265_v0 = vshll.u32 %v3936_v56, 16  ;;  %v3973_v60 = vld [vmem:[#allocation2 + $0xc] sm:$0x1] }
 0x12b   : > { %v1276_v27 = vor.u32 %v1275_v42, %v1272_v57  ;;  %3228 = vmatprep.mubr.msk.bf16.mxu0 %vm1325_vm12, %v2991_v23  ;;  %v1279_v16 = vshll.u32 %v3944_v14, 16  ;;  %v1304_v17 = vor.u32 %v1303_v62, %v1300_v1  ;;  %v1307_v34 = vshll.u32 %v3946_v15, 16  ;;  %v3987_v46 = vld [vmem:[#allocation2 + $0x14] sm:$0x1]  ;;  %v2016_v12 = vld [vmem:[#allocation2 + $0x8] sm:$0xe] }
 0x12c   : > { %v1240_v39 = vsel %vm3628_vm3, %v1235_v32, %v1239_v18  ;;  %v1254_v33 = vsel %vm3628_vm3, %v1249_v11, %v1253_v19  ;;  %v1263_v22 = vrot.slane %v1262_v25, 4  ;;  %v2417_v50 = vshll.u32 %v3958_v31, 16  ;;  %v2017_v1 = vld [vmem:[#allocation2 + $0x10] sm:$0xe]  ;;  %v4018_v11 = vld [vmem:[#allocation2 + $0x1c] sm:$0x1] }
 0x12d   : > { %v1277_v41 = vrot.slane %v1276_v27, 4  ;;  %v2992_v53 = vcombine.low %v1240_v39, %v1254_v33  ;;  %v1267_v21 = vrot.slane %v1265_v0, 5  ;;  %v1281_v61 = vrot.slane %v1279_v16, 5  ;;  %v3396_v10 = vld [vmem:[#allocation2 + $0x8] ss:$8 sps:$4 sm:$0xff]  }
 0x12e   : > { %v3968_v4 = vrot.slane %v1304_v17, 4  ;;  %v3970_v5 = vrot.slane %v1307_v34, 5  ;;  %v3008_v54 = vrot.slane %v1508_v40, 9  ;;  %v1540_v55 = vrot.slane %v3912_v2, 5  ;;  %v4027_v39 = vld [vmem:[#allocation2 + $0x24] sm:$0x1] }
 0x12f   : > { %v3009_v58 = vrot.slane %v1509_v26, 9  ;;  %3229 = vmatmul.mubr.msk.bf16.vlgmr.msra.gmra.mxu0 %vm1325_vm12, %v2992_v53  ;;  %v1268_v63 = vsel %vm3628_vm3, %v1263_v22, %v1267_v21  ;;  %v1282_v52 = vsel %vm3628_vm3, %v1277_v41, %v1281_v61  ;;  %v1544_v24 = vrot.slane %v3924_v38, 5  ;;  %v2018_v8 = vld [vmem:[#allocation2 + $0x18] sm:$0xe]  ;;  %v2019_v33 = vld [vmem:[#allocation2 + $0x20] sm:$0xe] }
 0x130   : > { %v3010_v2 = vrot.slane %v1510_v49, 9  ;;  %v1188_v62 = vld [vmem:[#allocation2 + $0x30] sm:$0xf]  ;;  %3247 = vmatpush3.bf16.msra.mxu0 %v3821_v35  ;;  %v2993_v47 = vcombine.low %v1268_v63, %v1282_v52  ;;  %v3990_v57 = vld [vmem:[#allocation2 + $0x34] sm:$0x1]  ;;  %v3998_v42 = vsel %vm3982_vm15, %v3007_v36, %v1536_v37  ;;  %v4002_v38 = vsel %vm3982_vm15, %v3008_v54, %v1540_v55 }
 0x131   : > { %v1284_v23 = vshrl.u32 %v1188_v62, 16  ;;  %v1287_v32 = vshll.u32 %v1188_v62, 16  ;;  %v3002_v35 = vcombine.low %v1188_v62, %v3927_v45  ;;  %v1293_v18 = vshll.u32 %v3990_v57, 16  ;;  %3330 = vmatprep.subr.msk.bf16.mxu0 %vm1338_vm11, %v3809_v30  ;;  %v1512_v45 = vld [vmem:[#allocation2 + $0x28] sm:$0xe] }
 0x132   : > { %3232 = vmatprep.mubr.msk.bf16.mxu0 %vm1325_vm12, %v2993_v47  ;;  %v1310_v20 = vsel %vm3628_vm3, %v3968_v4, %v3970_v5  ;;  %v4015_v36 = vsel %vm3982_vm15, %v3009_v58, %v1544_v24  ;;  %v1548_v37 = vrot.slane %v3898_v59, 5  ;;  %v4023_v30 = vrot.slane %v2414_v9, 4  ;;  %v1513_v22 = vld [vmem:[#allocation2 + $0x30] sm:$0xe]  ;;  %v1514_v61 = vld [vmem:[#allocation2 + $0x38] sm:$0xe] }
 0x133   : > { %v1286_v19 = vrot.slane %v1284_v23, 4  ;;  %v1289_v25 = vrot.slane %v1287_v32, 5  ;;  %3243 = vmatmul.mubr.msk.bf16.gmra.mxu1 %vm1325_vm12, %v3002_v35  ;;  %v3042_v0 = vrot.slane %v2016_v12, 9  ;;  %v2042_v27 = vrot.slane %v3973_v60, 5  ;;  %v4045_v4 = vld [vmem:[#allocation2 + $0x2c] sm:$0x1] }
 0x134   : > { %3258 = vmatprep.mubr.msk.bf16.mxu1 %vm1325_vm12, %v3396_v10  ;;  %v1295_v59 = vrot.slane %v1293_v18, 5  ;;  %v3016_v16 = vcombine.low %v3998_v42, %v4002_v38  ;;  %v3043_v17 = vrot.slane %v2017_v1, 9  ;;  %v2046_v7 = vrot.slane %v3987_v46, 5  ;;  %v3397_v5 = vld [vmem:[#allocation2 + $0x18] ss:$8 sps:$4 sm:$0xff]  }
 0x135   : > { %v1290_v9 = vor.u32 %v1289_v25, %v1286_v19  ;;  %v4035_v34 = vsel %vm3982_vm15, %v3010_v2, %v1548_v37  ;;  %v3011_v40 = vrot.slane %v1511_v3, 9  ;;  %v1552_v26 = vrot.slane %v3936_v56, 5  ;;  %v4052_v63 = vld [vmem:[#allocation2 + $0x34] sm:$0x1]  ;;  %v2020_v12 = vld [vmem:[#allocation2 + $0x28] sm:$0xe] }
 0x136   : > { %v3017_v41 = vcombine.low %v4015_v36, %v4035_v34  ;;  %v4042_v49 = vsel %vm3982_vm15, %v3043_v17, %v2046_v7  ;;  %v3012_v53 = vrot.slane %v1512_v45, 9  ;;  %v1556_v21 = vrot.slane %v3944_v14, 5  ;;  %v2021_v42 = vld [vmem:[#allocation2 + $0x30] sm:$0xe]  ;;  %v1786_v38 = vld [vmem:[#allocation2 + $0x8] sm:$0xf] }
 0x137   : > { %v1291_v54 = vrot.slane %v1290_v9, 4  ;;  %v4049_v56 = vsel %vm3982_vm15, %v3042_v0, %v2042_v27  ;;  %v3044_v55 = vrot.slane %v2018_v8, 9  ;;  %v2050_v58 = vrot.slane %v4018_v11, 5  ;;  %v3398_v32 = vld [vmem:[#allocation2 + $0x28] ss:$8 sps:$4 sm:$0xff]  }
 0x138   : > { %v3051_v52 = vcombine.low %v4049_v56, %v4042_v49  ;;  %v3045_v24 = vrot.slane %v2019_v33, 9  ;;  %v2054_v14 = vrot.slane %v4027_v39, 5  ;;  %v3013_v2 = vrot.slane %v1513_v22, 9  ;;  %v1788_v19 = vld [vmem:[#allocation2 + $0x10] sm:$0xf] }
 0x139   : > { %v1296_v1 = vsel %vm3628_vm3, %v1291_v54, %v1295_v59  ;;  %v4061_v62 = vsel %vm3982_vm15, %v3011_v40, %v1552_v26  ;;  %v4065_v10 = vsel %vm3982_vm15, %v3012_v53, %v1556_v21  ;;  %v1560_v47 = vrot.slane %v3990_v57, 5  ;;  %v4090_v59 = vld [vmem:[#allocation2 + $0x3c] sm:$0x1]  ;;  %v4100_v40 = vld [vmem:[#allocation2 + $0x44] sm:$0x1] }
 0x13a   : > { %v2994_v23 = vcombine.low %v1296_v1, %v1310_v20  ;;  %v4070_v35 = vsel %vm3982_vm15, %v3045_v24, %v2054_v14  ;;  %v3014_v18 = vrot.slane %v1514_v61, 9  ;;  %v1564_v3 = vrot.slane %v3946_v15, 5  ;;  %v2022_v26 = vld [vmem:[#allocation2 + $0x38] sm:$0xe]  ;;  %v2023_v21 = vld [vmem:[#allocation2 + $0x40] sm:$0xe] }
 0x13b   : > { %3259 = vmatmul.mubr.msk.bf16.vlgmr.msra.gmra.mxu1 %vm1325_vm12, %v3397_v5  ;;  %v4076_v37 = vsel %vm3982_vm15, %v3044_v55, %v2050_v58  ;;  %v4080_v57 = vsel %vm3982_vm15, %v3013_v2, %v1560_v47  ;;  %v3046_v45 = vrot.slane %v2020_v12, 9  ;;  %v2058_v20 = vrot.slane %v4045_v4, 5  ;;  %v1790_v55 = vld [vmem:[#allocation2 + $0x18] sm:$0xf]  ;;  %v1792_v12 = vld [vmem:[#allocation2 + $0x20] sm:$0xf] }
 0x13c   : > { %3233 = vmatmul.mubr.msk.bf16.gmra.mxu0 %vm1325_vm12, %v2994_v23  ;;  %3262 = vmatprep.mubr.msk.bf16.mxu1 %vm1325_vm12, %v3398_v32  ;;  %v4087_v15 = vsel %vm3982_vm15, %v3014_v18, %v1564_v3  ;;  %v3047_v25 = vrot.slane %v2021_v42, 9  ;;  %v2062_v0 = vrot.slane %v4052_v63, 5  ;;  %v1803_v27 = vshrl.u32 %v1786_v38, 16  ;;  %v3399_v1 = vld [vmem:[#allocation2 + $0x38] ss:$8 sps:$4 sm:$0xff]  }
 0x13d   : > { %3248 = vmatprep.mubr.msk.bf16.mxu0 %vm1325_vm12, %v3016_v16  ;;  %v3018_v17 = vcombine.low %v4061_v62, %v4065_v10  ;;  %3277 = vmatpush3.bf16.msra.mxu1 %v3852_v6  ;;  %v3052_v7 = vcombine.low %v4076_v37, %v4070_v35  ;;  %v3019_v8 = vcombine.low %v4080_v57, %v4087_v15  ;;  %v1806_v9 = vshll.u32 %v1786_v38, 16  ;;  %v2295_v56 = vld [vmem:[#allocation2 + $0x18] sm:$0xf] }
 0x13e   : > { %v4104_v33 = vsel %vm3982_vm15, %v3047_v25, %v2062_v0  ;;  %v1805_v16 = vrot.slane %v1803_v27, 4  ;;  %v1817_v22 = vshrl.u32 %v1788_v19, 16  ;;  %v1820_v53 = vshll.u32 %v1788_v19, 16  ;;  %3333 = vmatprep.subr.msk.bf16.mxu1 %vm1338_vm11, %v3839_v44  ;;  %v4136_v0 = vld [vmem:[#allocation2 + $0x14] sm:$0x1] }
 0x13f   : > { %v4110_v6 = vsel %vm3982_vm15, %v3046_v45, %v2058_v20  ;;  %v1808_v61 = vrot.slane %v1806_v9, 5  ;;  %v1812_v5 = vshll.u32 %v3973_v60, 16  ;;  %v1826_v54 = vshll.u32 %v3987_v46, 16  ;;  %v2293_v45 = vld [vmem:[#allocation2 + $0x10] sm:$0xf] }
 0x140   : > { %v1819_v58 = vrot.slane %v1817_v22, 4  ;;  %v1822_v24 = vrot.slane %v1820_v53, 5  ;;  %v3048_v14 = vrot.slane %v2022_v26, 9  ;;  %v2066_v2 = vrot.slane %v4090_v59, 5  ;;  %v4147_v26 = vld [vmem:[#allocation2 + $0x1c] sm:$0x1] }
 0x141   : > { %v3053_v44 = vcombine.low %v4110_v6, %v4104_v33  ;;  %v1809_v62 = vor.u32 %v1808_v61, %v1805_v16  ;;  %v3049_v10 = vrot.slane %v2023_v21, 9  ;;  %v2070_v47 = vrot.slane %v4100_v40, 5  ;;  %v1796_v21 = vld [vmem:[#allocation2 + $0x30] sm:$0xf] }
 0x142   : > { %v1823_v42 = vor.u32 %v1822_v24, %v1819_v58  ;;  %v1828_v38 = vrot.slane %v1826_v54, 5  ;;  %v1831_v60 = vshrl.u32 %v1790_v55, 16  ;;  %v1834_v23 = vshll.u32 %v1790_v55, 16 }
 0x143   : > { %3263 = vmatmul.mubr.msk.bf16.gmra.mxu1 %vm1325_vm12, %v3399_v1  ;;  %v1810_v46 = vrot.slane %v1809_v62, 4  ;;  %v4121_v32 = vsel %vm3982_vm15, %v3049_v10, %v2070_v47  ;;  %v1840_v18 = vshll.u32 %v4018_v11, 16  ;;  %v1845_v3 = vshrl.u32 %v1792_v12, 16 }
 0x144   : > { %3249 = vmatmul.mubr.msk.bf16.vlgmr.msra.gmra.mxu0 %vm1325_vm12, %v3017_v41  ;;  %3278 = vmatprep.mubr.msk.bf16.mxu1 %vm1325_vm12, %v3051_v52  ;;  %v1824_v20 = vrot.slane %v1823_v42, 4  ;;  %v4134_v19 = vsel %vm3982_vm15, %v3048_v14, %v2066_v2  ;;  %v1833_v25 = vrot.slane %v1831_v60, 4  ;;  %v1836_v11 = vrot.slane %v1834_v23, 5  ;;  %v4160_v42 = vld [vmem:[%s4480_s7] sm:$0x3] }
 0x145   : > { %3267 = vmatpush3.bf16.msra.mxu0 %v3846_v48  ;;  %3252 = vmatprep.mubr.msk.bf16.mxu0 %vm1325_vm12, %v3018_v17  ;;  %v1814_v36 = vrot.slane %v1812_v5, 5  ;;  %v3054_v34 = vcombine.low %v4134_v19, %v4121_v32  ;;  %v1847_v41 = vrot.slane %v1845_v3, 4  ;;  %v1848_v49 = vshll.u32 %v1792_v12, 16  ;;  %v1794_v17 = vld [vmem:[#allocation2 + $0x28] sm:$0xf] }
 0x146   : > { %v1829_v52 = vsel %vm3628_vm3, %v1824_v20, %v1828_v38  ;;  %3332 = vmatprep.subr.msk.bf16.mxu0 %vm1338_vm11, %v3834_v43  ;;  %v1837_v27 = vor.u32 %v1836_v11, %v1833_v25  ;;  %v1854_v9 = vshll.u32 %v4027_v39, 16  ;;  %v2310_v48 = vshrl.u32 %v2293_v45, 16  ;;  %v2297_v60 = vld [vmem:[#allocation2 + $0x20] sm:$0xf] }
 0x147   : > { %v1815_v33 = vsel %vm3628_vm3, %v1810_v46, %v1814_v36  ;;  %v1842_v16 = vrot.slane %v1840_v18, 5  ;;  %v1850_v22 = vrot.slane %v1848_v49, 5  ;;  %v2313_v53 = vshll.u32 %v2293_v45, 16  ;;  %v4174_v45 = vld [vmem:[#allocation2 + $0x24] sm:$0x1] }
 0x148   : > { %v3034_v6 = vcombine.low %v1815_v33, %v1829_v52  ;;  %v2312_v61 = vrot.slane %v2310_v48, 4  ;;  %v2319_v5 = vshll.u32 %v4136_v0, 16  ;;  %v2324_v54 = vshrl.u32 %v2295_v56, 16 }
 0x149   : > { %v1838_v43 = vrot.slane %v1837_v27, 4  ;;  %v1851_v55 = vor.u32 %v1850_v22, %v1847_v41  ;;  %v2315_v58 = vrot.slane %v2313_v53, 5  ;;  %v2327_v39 = vshll.u32 %v2295_v56, 16  ;;  %v1798_v27 = vld [vmem:[#allocation2 + $0x38] sm:$0xf] }
 0x14a   : > { %v1856_v24 = vrot.slane %v1854_v9, 5  ;;  %v2326_v14 = vrot.slane %v2324_v54, 4  ;;  %v2333_v2 = vshll.u32 %v4147_v26, 16  ;;  %v1859_v12 = vshrl.u32 %v1794_v17, 16 }
 0x14b   : > { %3279 = vmatmul.mubr.msk.bf16.vlgmr.msra.gmra.mxu1 %vm1325_vm12, %v3052_v7  ;;  %v1852_v1 = vrot.slane %v1851_v55, 4  ;;  %v2316_v62 = vor.u32 %v2315_v58, %v2312_v61  ;;  %v2329_v10 = vrot.slane %v2327_v39, 5  ;;  %v1862_v47 = vshll.u32 %v1794_v17, 16 }
 0x14c   : > { %3253 = vmatmul.mubr.msk.bf16.gmra.mxu0 %vm1325_vm12, %v3019_v8  ;;  %3282 = vmatprep.mubr.msk.bf16.mxu1 %vm1325_vm12, %v3053_v44  ;;  %v2321_v38 = vrot.slane %v2319_v5, 5  ;;  %v1861_v35 = vrot.slane %v1859_v12, 4  ;;  %v1868_v37 = vshll.u32 %v4045_v4, 16  ;;  %v1873_v7 = vshrl.u32 %v1796_v21, 16  ;;  %v2299_v4 = vld [vmem:[#allocation2 + $0x28] sm:$0xf] }
 0x14d   : > { %3268 = vmatprep.mubr.msk.bf16.mxu0 %vm1325_vm12, %v3034_v6  ;;  %v1857_v23 = vsel %vm3628_vm3, %v1852_v1, %v1856_v24  ;;  %v2317_v46 = vrot.slane %v2316_v62, 4  ;;  %v2330_v18 = vor.u32 %v2329_v10, %v2326_v14  ;;  %v1864_v3 = vrot.slane %v1862_v47, 5  ;;  %3297 = vmatpush3.bf16.msra.mxu1 %v3860_v28  ;;  %v4181_v28 = vld [vmem:[#allocation2 + $0x2c] sm:$0x1]  ;;  %v1800_v6 = vld [vmem:[#allocation2 + $0x40] sm:$0xf] }
 0x14e   : > { %v1843_v57 = vsel %vm3628_vm3, %v1838_v43, %v1842_v16  ;;  %v2335_v15 = vrot.slane %v2333_v2, 5  ;;  %v1875_v8 = vrot.slane %v1873_v7, 4  ;;  %v1876_v44 = vshll.u32 %v1796_v21, 16  ;;  %3335 = vmatprep.subr.msk.bf16.mxu1 %vm2733_vm0, %v4160_v42  ;;  %v4193_v43 = vld [vmem:[%s4477_s4 + $0x20] sm:$0xf] }
 0x14f   : > { %v2322_v20 = vsel %vm3628_vm3, %v2317_v46, %v2321_v38  ;;  %v2331_v25 = vrot.slane %v2330_v18, 4  ;;  %v1865_v11 = vor.u32 %v1864_v3, %v1861_v35  ;;  %v1882_v36 = vshll.u32 %v4052_v63, 16  ;;  %v2301_v10 = vld [vmem:[#allocation2 + $0x30] sm:$0xf] }
 0x150   : > { %v3035_v41 = vcombine.low %v1843_v57, %v1857_v23  ;;  %v1878_v49 = vrot.slane %v1876_v44, 5  ;;  %v2338_v56 = vshrl.u32 %v2297_v60, 16  ;;  %v2341_v52 = vshll.u32 %v2297_v60, 16 }
 0x151   : > { %v2336_v9 = vsel %vm3628_vm3, %v2331_v25, %v2335_v15  ;;  %v1866_v48 = vrot.slane %v1865_v11, 4  ;;  %v1870_v17 = vrot.slane %v1868_v37, 5  ;;  %v2352_v33 = vshrl.u32 %v2299_v4, 16  ;;  %v2303_v37 = vld [vmem:[#allocation2 + $0x38] sm:$0xf] }
 0x152   : > { %v3069_v16 = vcombine.low %v2322_v20, %v2336_v9  ;;  %v1879_v22 = vor.u32 %v1878_v49, %v1875_v8  ;;  %v2340_v53 = vrot.slane %v2338_v56, 4  ;;  %v2343_v21 = vrot.slane %v2341_v52, 5 }
 0x153   : > { %3283 = vmatmul.mubr.msk.bf16.gmra.mxu1 %vm1325_vm12, %v3054_v34  ;;  %v1884_v63 = vrot.slane %v1882_v36, 5  ;;  %v2347_v61 = vshll.u32 %v4174_v45, 16  ;;  %v2354_v5 = vrot.slane %v2352_v33, 4  ;;  %v2355_v54 = vshll.u32 %v2299_v4, 16  ;;  %v4214_v4 = vld [vmem:[#allocation2 + $0x34] sm:$0x1] }
 0x154   : > { %3269 = vmatmul.mubr.msk.bf16.vlgmr.msra.gmra.mxu0 %vm1325_vm12, %v3035_v41  ;;  %3298 = vmatprep.mubr.msk.bf16.mxu1 %vm1325_vm12, %v3069_v16  ;;  %v1880_v55 = vrot.slane %v1879_v22, 4  ;;  %v2344_v58 = vor.u32 %v2343_v21, %v2340_v53  ;;  %v2361_v32 = vshll.u32 %v4181_v28, 16  ;;  %v1887_v19 = vshrl.u32 %v1798_v27, 16  ;;  %v2305_v41 = vld [vmem:[#allocation2 + $0x40] sm:$0xf] }
 0x155   : > { %3287 = vmatpush3.bf16.msra.mxu0 %v3856_v51  ;;  %v2357_v34 = vrot.slane %v2355_v54, 5  ;;  %v1890_v39 = vshll.u32 %v1798_v27, 16  ;;  %v1901_v24 = vshrl.u32 %v1800_v6, 16  ;;  %v4201_v14 = vrot.slane %v2417_v50, 5  ;;  %v4218_v27 = vld [vmem:[#allocation2 + $0x3c] sm:$0x1] }
 0x156   : > { %v1871_v2 = vsel %vm3628_vm3, %v1866_v48, %v1870_v17  ;;  %v1885_v12 = vsel %vm3628_vm3, %v1880_v55, %v1884_v63  ;;  %v2345_v1 = vrot.slane %v2344_v58, 4  ;;  %v1889_v62 = vrot.slane %v1887_v19, 4  ;;  %3334 = vmatprep.subr.msk.bf16.mxu0 %vm1338_vm11, %v4193_v43  ;;  %v4223_v16 = vld [vmem:[#allocation2 + $0x44] sm:$0x1] }
 0x157   : > { %v3036_v51 = vcombine.low %v1871_v2, %v1885_v12  ;;  %v2349_v47 = vrot.slane %v2347_v61, 5  ;;  %v2358_v38 = vor.u32 %v2357_v34, %v2354_v5  ;;  %v1892_v35 = vrot.slane %v1890_v39, 5 }
 0x158   : > { %v2363_v7 = vrot.slane %v2361_v32, 5  ;;  %v1896_v50 = vshll.u32 %v4090_v59, 16  ;;  %v1903_v60 = vrot.slane %v1901_v24, 4  ;;  %v1904_v23 = vshll.u32 %v1800_v6, 16  ;;  %v3400_v24 = vld [vmem:[#allocation2 + $0x10] ss:$8 sps:$4 sm:$0xff]  }
 0x159   : > { %3272 = vmatprep.mubr.msk.bf16.mxu0 %vm1325_vm12, %v3036_v51  ;;  %v2359_v46 = vrot.slane %v2358_v38, 4  ;;  %v1893_v18 = vor.u32 %v1892_v35, %v1889_v62  ;;  %v2366_v3 = vshrl.u32 %v2301_v10, 16  ;;  %v2369_v57 = vshll.u32 %v2301_v10, 16 }
 0x15a   : > { %v2350_v15 = vsel %vm3628_vm3, %v2345_v1, %v2349_v47  ;;  %v1906_v8 = vrot.slane %v1904_v23, 5  ;;  %v1910_v44 = vshll.u32 %v4100_v40, 16  ;;  %v2380_v20 = vshrl.u32 %v2303_v37, 16  ;;  %v3401_v23 = vld [vmem:[#allocation2 + $0x20] ss:$8 sps:$4 sm:$0xff]  }
 0x15b   : > { %v2364_v59 = vsel %vm3628_vm3, %v2359_v46, %v2363_v7  ;;  %v1894_v25 = vrot.slane %v1893_v18, 4  ;;  %v2368_v11 = vrot.slane %v2366_v3, 4  ;;  %v2371_v36 = vrot.slane %v2369_v57, 5 }
 0x15c   : > { %v3070_v49 = vcombine.low %v2350_v15, %v2364_v59  ;;  %v1898_v56 = vrot.slane %v1896_v50, 5  ;;  %v1907_v52 = vor.u32 %v1906_v8, %v1903_v60  ;;  %v2735_v9 = vsel %vm2733_vm0, %v4160_v42, 0  ;;  %v2713_v50 = vpop.permute.xlu0 %2712  ;;  %v2523_v60 = vld [vmem:[#allocation2 + $0x10] sm:$0xe]  ;;  %v3403_v59 = vld [vmem:[#allocation2 + $0x40] ss:$8 sps:$4 sm:$0xff]  }
 0x15d   : > { %v2372_v48 = vor.u32 %v2371_v36, %v2368_v11  ;;  %v2375_v40 = vshll.u32 %v4214_v4, 16  ;;  %v2382_v17 = vrot.slane %v2380_v20, 4  ;;  %v2383_v33 = vshll.u32 %v2303_v37, 16  ;;  %v2527_v20 = vld [vmem:[#allocation2 + $0x30] sm:$0xe] }
 0x15e   : > { %3299 = vmatmul.mubr.msk.bf16.vlgmr.msra.gmra.mxu1 %vm1325_vm12, %v3070_v49  ;;  %v1908_v22 = vrot.slane %v1907_v52, 4  ;;  %v1912_v53 = vrot.slane %v1910_v44, 5  ;;  %v2394_v21 = vshrl.u32 %v2305_v41, 16  ;;  %v2397_v6 = vshll.u32 %v2305_v41, 16  ;;  %v2717_v44 = vpop.permute.xlu1 %2716  ;;  %v2528_v49 = vld [vmem:[#allocation2 + $0x38] sm:$0xe] }
 0x15f   : > { %v1899_v63 = vsel %vm3628_vm3, %v1894_v25, %v1898_v56  ;;  %v2373_v61 = vrot.slane %v2372_v48, 4  ;;  %v2385_v5 = vrot.slane %v2383_v33, 5  ;;  %v2389_v42 = vshll.u32 %v4218_v27, 16  ;;  %3317 = vmatpush3.bf16.msra.mxu1 %v2735_v9  ;;  %v2530_v33 = vld [vmem:[#allocation2 + $0x48] sm:$0xe] }
 0x160   : > { %v1913_v54 = vsel %vm3628_vm3, %v1908_v22, %v1912_v53  ;;  %v2396_v55 = vrot.slane %v2394_v21, 4  ;;  %v2399_v58 = vrot.slane %v2397_v6, 5  ;;  %v2403_v32 = vshll.u32 %v4223_v16, 16  ;;  %v2715_v15 = vpop.permute.xlu0 %2714  ;;  %v2529_v53 = vld [vmem:[#allocation2 + $0x40] sm:$0xe] }
 0x161   : > { %v3037_v19 = vcombine.low %v1899_v63, %v1913_v54  ;;  %v2377_v34 = vrot.slane %v2375_v40, 5  ;;  %v2386_v39 = vor.u32 %v2385_v5, %v2382_v17  ;;  %v2391_v62 = vrot.slane %v2389_v42, 5 }
 0x162   : > { %v2400_v2 = vor.u32 %v2399_v58, %v2396_v55  ;;  %v2405_v51 = vrot.slane %v2403_v32, 5  ;;  %v2420_v47 = vsel %vm3628_vm3, %v4023_v30, %v4201_v14  ;;  %v2606_v46 = vsel %vm1338_vm11, %v4193_v43, 0  ;;  %v3402_v30 = vld [vmem:[#allocation2 + $0x30] ss:$8 sps:$4 sm:$0xff]   ;;  %v2526_v43 = vld [vmem:[#allocation2 + $0x28] sm:$0xe] }
 0x163   : > { %3273 = vmatmul.mubr.msk.bf16.gmra.mxu0 %vm1325_vm12, %v3037_v19  ;;  %v2378_v12 = vsel %vm3628_vm3, %v2373_v61, %v2377_v34  ;;  %v2387_v1 = vrot.slane %v2386_v39, 4  ;;  %v2524_v14 = vld [vmem:[#allocation2 + $0x18] sm:$0xe]  ;;  %v3077_v29 = vrot.slane %v2523_v60, 9  ;;  %v2549_v18 = vrot.slane %v4136_v0, 5 }
 0x164   : > { %3288 = vmatprep.mubr.msk.bf16.mxu0 %vm1325_vm12, %v3400_v24  ;;  %v2401_v10 = vrot.slane %v2400_v2, 4  ;;  %v3078_v3 = vrot.slane %v2524_v14, 9  ;;  %v2553_v57 = vrot.slane %v4147_v26, 5  ;;  %v2525_v0 = vld [vmem:[#allocation2 + $0x20] sm:$0xe]  ;;  %v3080_v36 = vrot.slane %v2526_v43, 9 }
 0x165   : > { %v2392_v38 = vsel %vm3628_vm3, %v2387_v1, %v2391_v62  ;;  %v2550_v8 = vsel %vm3982_vm15, %v3077_v29, %v2549_v18  ;;  %v2561_v41 = vrot.slane %v4181_v28, 5  ;;  %v3081_v26 = vrot.slane %v2527_v20, 9  ;;  %v2719_v28 = vpop.permute.xlu1 %2718 }
 0x166   : > { %v3071_v35 = vcombine.low %v2378_v12, %v2392_v38  ;;  %v2406_v37 = vsel %vm3628_vm3, %v2401_v10, %v2405_v51  ;;  %v2554_v25 = vsel %vm3982_vm15, %v3078_v3, %v2553_v57  ;;  %v2565_v56 = vrot.slane %v4214_v4, 5 }
 0x167   : > { %v3072_v7 = vcombine.low %v2406_v37, %v2420_v47  ;;  %v3086_v11 = vcombine.low %v2550_v8, %v2554_v25  ;;  %v3079_v52 = vrot.slane %v2525_v0, 9  ;;  %v2557_v9 = vrot.slane %v4174_v45, 5 }
 0x168   : > { %3302 = vmatprep.mubr.msk.bf16.mxu1 %vm1325_vm12, %v3071_v35  ;;  %v3082_v48 = vrot.slane %v2528_v49, 9  ;;  %v2569_v40 = vrot.slane %v4218_v27, 5  ;;  %v2562_v17 = vsel %vm3982_vm15, %v3080_v36, %v2561_v41  ;;  %v2566_v22 = vsel %vm3982_vm15, %v3081_v26, %v2565_v56 }
 0x169   : > { %3303 = vmatmul.mubr.msk.bf16.gmra.mxu1 %vm1325_vm12, %v3072_v7  ;;  %v2558_v4 = vsel %vm3982_vm15, %v3079_v52, %v2557_v9  ;;  %v3084_v45 = vrot.slane %v2530_v33, 9  ;;  %v3083_v63 = vrot.slane %v2529_v53, 9  ;;  %v2573_v61 = vrot.slane %v4223_v16, 5 }
 0x16a   : > { %3318 = vmatprep.mubr.msk.bf16.mxu1 %vm2720_vm1, %v2713_v50  ;;  %v3087_v21 = vcombine.low %v2558_v4, %v2562_v17  ;;  %v2570_v6 = vsel %vm3982_vm15, %v3082_v48, %v2569_v40  ;;  %v2577_v5 = vrot.slane %v3958_v31, 5 }
 0x16b   : > { %3289 = vmatmul.mubr.msk.bf16.vlgmr.msra.gmra.mxu0 %vm1325_vm12, %v3401_v23  ;;  %v3088_v27 = vcombine.low %v2566_v22, %v2570_v6  ;;  %v2574_v42 = vsel %vm3982_vm15, %v3083_v63, %v2573_v61 }
 0x16c   : > { %3307 = vmatpush3.bf16.msra.mxu0 %v2606_v46  ;;  %3292 = vmatprep.mubr.msk.bf16.mxu0 %vm1325_vm12, %v3402_v30  ;;  %v2578_v54 = vsel %vm3982_vm15, %v3084_v45, %v2577_v5 }
 0x16d   : > { %v3089_v55 = vcombine.low %v2574_v42, %v2578_v54 }
 0x171   : > { %3319 = vmatmul.mubr.msk.bf16.vlgmr.msra.gmra.mxu1 %vm2720_vm1, %v2715_v15 }
 0x172   : > { %3322 = vmatprep.mubr.msk.bf16.mxu1 %vm2720_vm1, %v2717_v44 }
 0x173   : > { %3293 = vmatmul.mubr.msk.bf16.gmra.mxu0 %vm1325_vm12, %v3403_v59 }
 0x174   : > { %3308 = vmatprep.mubr.msk.bf16.mxu0 %vm1325_vm12, %v3086_v11 }
 0x179   : > { %3323 = vmatmul.mubr.msk.bf16.gmra.mxu1 %vm2720_vm1, %v2719_v28 }
 0x17b   : > { %3309 = vmatmul.mubr.msk.bf16.vlgmr.msra.gmra.mxu0 %vm1325_vm12, %v3087_v21 }
 0x17c   : > { %3312 = vmatprep.mubr.msk.bf16.mxu0 %vm1325_vm12, %v3088_v27 }
 0x183   : > { %3313 = vmatmul.mubr.msk.bf16.gmra.mxu0 %vm1325_vm12, %v3089_v55 }
 0x1e3   : > { %v3240_v58 = vpop.f32.mrf.mxu1 }
 0x1e5   : > { %v1476_v32 = vpop.f32.mrf.mxu1 }
 0x1e7   : > { %v3241_v19 = vpop.f32.mrf.mxu1 }
 0x1e9   : > { %v1479_v34 = vpop.f32.mrf.mxu1 }
 0x1ef   : > { %v3230_v16 = vpop.f32.mrf.mxu0 }
 0x1f0   : > { %v1485_v22 = vadd.f32 %v3240_v58, %v3230_v16 }
 0x1f1   : > { %v1376_v39 = vpop.f32.mrf.mxu0 }
 0x1f2   : > { %v1477_v21 = vadd.f32 %v1476_v32, %v1376_v39 }
 0x1f3   : > { %v3244_v31 = vpop.f32.mrf.mxu1  ;;  %v3231_v24 = vpop.f32.mrf.mxu0 }
 0x1f4   : > { %v1488_v63 = vadd.f32 %v3241_v19, %v3231_v24 }
 0x1f5   : > { %v4283_v2 = vpop.f32.mrf.mxu1  ;;  %v1379_v1 = vpop.f32.mrf.mxu0 }
 0x1f6   : > { %v1480_v54 = vadd.f32 %v1479_v34, %v1379_v1 }
 0x1f7   : > { %v4285_v12 = vpop.f32.mrf.mxu1 }
 0x1f9   : > { %v4287_v62 = vpop.f32.mrf.mxu1 }
 0x1fb   : > { %v3260_v13 = vpop.f32.mrf.mxu1 }
 0x1fc   : > { %v3234_v10 = vpop.f32.mrf.mxu0 }
 0x1fd   : > { %v1747_v51 = vpop.f32.mrf.mxu1 }
 0x1fe   : > { %v1392_v47 = vpop.f32.mrf.mxu0 }
 0x1ff   : > { %v3261_v38 = vpop.f32.mrf.mxu1  ;;  %v1493_v32 = vadd.f32 %v4283_v2, %v1392_v47 }
 0x200   : > { %v3235_v35 = vpop.f32.mrf.mxu0 }
 0x201   : > { %v4289_v37 = vpop.f32.mrf.mxu1 }
 0x202   : > { %v1395_v7 = vpop.f32.mrf.mxu0 }
 0x203   : > { %v4291_v50 = vpop.f32.mrf.mxu1  ;;  %v1496_v34 = vadd.f32 %v4287_v62, %v1395_v7 }
 0x204   : > { %v3250_v60 = vpop.f32.mrf.mxu0 }
 0x205   : > { %v4293_v23 = vpop.f32.mrf.mxu1  ;;  %v1662_v6 = vadd.f32 %v3250_v60, %v1485_v22 }
 0x206   : > { %v1629_v46 = vpop.f32.mrf.mxu0 }
 0x207   : > { %v4295_v30 = vpop.f32.mrf.mxu1  ;;  %v1660_v61 = vadd.f32 %v1629_v46, %v1477_v21  ;;  %v1504_v46 = vadd.f32 %v4285_v12, %v3235_v35  ;;  %v4336_v35 = vld [vmem:[%s4481_s8] ss:$0 sm:$0xff] }
 0x208   : > { %v3251_v14 = vpop.f32.mrf.mxu0 }
 0x209   : > { %v4297_v29 = vpop.f32.mrf.mxu1  ;;  %v1663_v55 = vadd.f32 %v3251_v14, %v1488_v63 }
 0x20a   : > { %v1632_v18 = vpop.f32.mrf.mxu0 }
 0x20b   : > { %v3280_v3 = vpop.f32.mrf.mxu1  ;;  %v1661_v58 = vadd.f32 %v1632_v18, %v1480_v54  ;;  %v1781_v24 = vadd.f32 %v3261_v38, %v1663_v55 }
 0x20c   : > { %v3254_v57 = vpop.f32.mrf.mxu0 }
 0x20d   : > { %v2135_v15 = vpop.f32.mrf.mxu1  ;;  %v1779_v14 = vadd.f32 %v4289_v37, %v1661_v58 }
 0x20e   : > { %v1645_v8 = vpop.f32.mrf.mxu0 }
 0x20f   : > { %v4299_v43 = vpop.f32.mrf.mxu1  ;;  %v1664_v1 = vadd.f32 %v1645_v8, %v1493_v32 }
 0x210   : > { %v3255_v44 = vpop.f32.mrf.mxu0 }
 0x211   : > { %v4301_v20 = vpop.f32.mrf.mxu1  ;;  %v1782_v12 = vadd.f32 %v4293_v23, %v1664_v1 }
 0x212   : > { %v1648_v59 = vpop.f32.mrf.mxu0 }
 0x213   : > { %v4303_v25 = vpop.f32.mrf.mxu1 }
 0x214   : > { %v3270_v0 = vpop.f32.mrf.mxu0 }
 0x215   : > { %v4305_v11 = vpop.f32.mrf.mxu1 }
 0x216   : > { %v1977_v36 = vpop.f32.mrf.mxu0 }
 0x217   : > { %v4307_v41 = vpop.f32.mrf.mxu1 }
 0x218   : > { %4496 = vst [vmem:[#allocation6_spill] sm:$0xff] %v4307_v41  ;;  %v3271_v26 = vpop.f32.mrf.mxu0  ;;  %v1501_v41 = vadd.f32 %v3244_v31, %v3234_v10 }
 0x219   : > { %v4309_v49 = vpop.f32.mrf.mxu1  ;;  %v2011_v10 = vadd.f32 %v3271_v26, %v1781_v24 }
 0x21a   : > { %4497 = vst [vmem:[#allocation7_spill] sm:$0xff] %v4309_v49  ;;  %v1980_v52 = vpop.f32.mrf.mxu0  ;;  %v1780_v49 = vadd.f32 %v3260_v13, %v1662_v6  ;;  %v1666_v39 = vadd.f32 %v3254_v57, %v1501_v41 }
 0x21b   : > { %v2009_v41 = vadd.f32 %v1980_v52, %v1779_v14 }
 0x21c   : > { %v2010_v16 = vadd.f32 %v3270_v0, %v1780_v49  ;;  %v1667_v0 = vadd.f32 %v3255_v44, %v1504_v46  ;;  %v1784_v2 = vadd.f32 %v4291_v50, %v1666_v39 }
 0x21d   : > { %v2167_v26 = vadd.f32 %v4301_v20, %v2009_v41 }
 0x21e   : > { %v4311_v56 = vpop.f32.mrf.mxu1  ;;  %v2168_v18 = vadd.f32 %v3280_v3, %v2010_v16  ;;  %v2169_v3 = vadd.f32 %v4299_v43, %v2011_v10  ;;  %v1785_v50 = vadd.f32 %v4295_v30, %v1667_v0  ;;  %v4348_v30 = vld [vmem:[%s4482_s9] ss:$0 sm:$0xff] }
 0x21f   : > { %v4353_v43 = vld [vmem:[%s4478_s5] ss:$0 sm:$0xff]  ;;  %v4502_v16 = vld [vmem:[#allocation6_spill] sm:$0xff] }
 0x220   : > { %v4313_v9 = vpop.f32.mrf.mxu1 }
 0x221   : > { %v4503_v32 = vld [vmem:[#allocation7_spill] sm:$0xff] }
 0x222   : > { %v4315_v48 = vpop.f32.mrf.mxu1 }
 0x223   : > { %4498 = vst [vmem:[#allocation8_spill] sm:$0xff] %v4315_v48  ;;  %v3274_v40 = vpop.f32.mrf.mxu0 }
 0x224   : > { %v4317_v28 = vpop.f32.mrf.mxu1  ;;  %v2014_v49 = vadd.f32 %v3274_v40, %v1784_v2 }
 0x225   : > { %v1993_v17 = vpop.f32.mrf.mxu0  ;;  %4499 = vst [vmem:[#allocation9_spill] sm:$0xff] %v4317_v28 }
 0x226   : > { %v2012_v8 = vadd.f32 %v1993_v17, %v1782_v12  ;;  %v2172_v6 = vadd.f32 %v4303_v25, %v2014_v49 }
 0x227   : > { %v3275_v33 = vpop.f32.mrf.mxu0 }
 0x229   : > { %v1996_v53 = vpop.f32.mrf.mxu0  ;;  %v4319_v4 = vpop.f32.mrf.mxu1 }
 0x22a   : > { %4500 = vst [vmem:[#allocation10_spill] sm:$0xff] %v4319_v4  ;;  %v1778_v4 = vadd.f32 %v1747_v51, %v1660_v61  ;;  %v1665_v51 = vadd.f32 %v1648_v59, %v1496_v34  ;;  %v4501_v54 = vld [vmem:[#allocation8_spill] sm:$0xff] }
 0x22b   : > { %v3290_v45 = vpop.f32.mrf.mxu0  ;;  %v4321_v27 = vpop.f32.mrf.mxu1 }
 0x22c   : > { %v2008_v19 = vadd.f32 %v1977_v36, %v1778_v4  ;;  %v2287_v36 = vadd.f32 %v3290_v45, %v2168_v18  ;;  %v1783_v44 = vadd.f32 %v4297_v29, %v1665_v51  ;;  %v2015_v4 = vadd.f32 %v3275_v33, %v1785_v50  ;;  %v4504_v34 = vld [vmem:[#allocation9_spill] sm:$0xff] }
 0x22d   : > { %v2254_v5 = vpop.f32.mrf.mxu0  ;;  %v4323_v42 = vpop.f32.mrf.mxu1  ;;  %v2170_v33 = vadd.f32 %v4305_v11, %v2012_v8 }
 0x22e   : > { %v2166_v38 = vadd.f32 %v2135_v15, %v2008_v19  ;;  %v2517_v52 = vadd.f32 %v4311_v56, %v2287_v36  ;;  %v2013_v21 = vadd.f32 %v1996_v53, %v1783_v44  ;;  %v4362_v53 = vld [vmem:[%s4479_s6] ss:$0 sm:$0xff]  ;;  %v2173_v11 = vadd.f32 %v4502_v16, %v2015_v4 }
 0x22f   : > { %v3291_v28 = vpop.f32.mrf.mxu0  ;;  %v4325_v48 = vpop.f32.mrf.mxu1 }
 0x230   : > { %v2285_v7 = vadd.f32 %v2254_v5, %v2166_v38  ;;  %v2288_v15 = vadd.f32 %v3291_v28, %v2169_v3  ;;  %v2171_v39 = vadd.f32 %v4503_v32, %v2013_v21 }
 0x231   : > { %v2257_v60 = vpop.f32.mrf.mxu0  ;;  %v3320_v22 = vpop.f32.mrf.mxu1  ;;  %v4505_v18 = vld [vmem:[#allocation10_spill] sm:$0xff] }
 0x232   : > { %v2811_v23 = vmul.f32 %v3320_v22, %v4336_v35  ;;  %v2286_v20 = vadd.f32 %v2257_v60, %v2167_v26  ;;  %v2515_v56 = vadd.f32 %v4313_v9, %v2285_v7  ;;  %v2518_v9 = vadd.f32 %v4501_v54, %v2288_v15 }
 0x233   : > { %v3294_v13 = vpop.f32.mrf.mxu0  ;;  %v2771_v31 = vpop.f32.mrf.mxu1 }
 0x234   : > { %v2291_v28 = vadd.f32 %v3294_v13, %v2172_v6  ;;  %v2809_v25 = vmul.f32 %v4336_v35, %v2771_v31  ;;  %v2826_v63 = vadd.f32 %v4348_v30, %v2811_v23  ;;  %v2516_v1 = vadd.f32 %v4504_v34, %v2286_v20 }
 0x235   : > { %v2270_v47 = vpop.f32.mrf.mxu0  ;;  %v3321_v57 = vpop.f32.mrf.mxu1 }
 0x236   : > { %v2289_v58 = vadd.f32 %v2270_v47, %v2170_v33  ;;  %v2812_v60 = vmul.f32 %v3321_v57, %v4336_v35  ;;  %v2824_v31 = vadd.f32 %v4348_v30, %v2809_v25  ;;  %v2521_v0 = vadd.f32 %v4505_v18, %v2291_v28 }
 0x237   : > { %v3295_v62 = vpop.f32.mrf.mxu0  ;;  %v2774_v37 = vpop.f32.mrf.mxu1 }
 0x238   : > { %v2292_v13 = vadd.f32 %v3295_v62, %v2173_v11  ;;  %v2810_v10 = vmul.f32 %v4336_v35, %v2774_v37  ;;  %v2827_v38 = vadd.f32 %v4348_v30, %v2812_v60  ;;  %v2519_v62 = vadd.f32 %v4321_v27, %v2289_v58 }
 0x239   : > { %v2273_v59 = vpop.f32.mrf.mxu0  ;;  %v3324_v40 = vpop.f32.mrf.mxu1 }
 0x23a   : > { %v2290_v36 = vadd.f32 %v2273_v59, %v2171_v39  ;;  %v2815_v49 = vmul.f32 %v3324_v40, %v4336_v35  ;;  %v2825_v50 = vadd.f32 %v4348_v30, %v2810_v10  ;;  %v2522_v59 = vadd.f32 %v4323_v42, %v2292_v13 }
 0x23b   : > { %v3310_v29 = vpop.f32.mrf.mxu0  ;;  %v2787_v55 = vpop.f32.mrf.mxu1 }
 0x23c   : > { %v2675_v17 = vadd.f32 %v3310_v29, %v2517_v52  ;;  %v2813_v44 = vmul.f32 %v4336_v35, %v2787_v55  ;;  %v2830_v21 = vadd.f32 %v4348_v30, %v2815_v49  ;;  %v2520_v20 = vadd.f32 %v4325_v48, %v2290_v36 }
 0x23d   : > { %v2642_v45 = vpop.f32.mrf.mxu0  ;;  %v3325_v41 = vpop.f32.mrf.mxu1 }
 0x23e   : > { %v2690_v61 = vmul.f32 %v4353_v43, %v2675_v17  ;;  %v2673_v5 = vadd.f32 %v2642_v45, %v2515_v56  ;;  %v2816_v29 = vmul.f32 %v3325_v41, %v4336_v35  ;;  %v2828_v25 = vadd.f32 %v4348_v30, %v2813_v44 }
 0x23f   : > { %v3311_v22 = vpop.f32.mrf.mxu0  ;;  %v2790_v4 = vpop.f32.mrf.mxu1 }
 0x240   : > { %v2705_v19 = vadd.f32 %v4362_v53, %v2690_v61  ;;  %v2688_v24 = vmul.f32 %v4353_v43, %v2673_v5  ;;  %v2676_v46 = vadd.f32 %v3311_v22, %v2518_v9  ;;  %v2831_v58 = vadd.f32 %v4348_v30, %v2816_v29 }
 0x241   : > { %v2645_v14 = vpop.f32.mrf.mxu0 }
 0x242   : > { %v2834_v51 = vadd.f32 %v2826_v63, %v2705_v19  ;;  %v2703_v2 = vadd.f32 %v4362_v53, %v2688_v24  ;;  %v2691_v47 = vmul.f32 %v4353_v43, %v2676_v46  ;;  %v2674_v57 = vadd.f32 %v2645_v14, %v2516_v1 }
 0x243   : > { %v3314_v12 = vpop.f32.mrf.mxu0  ;;  %v2814_v63 = vmul.f32 %v4336_v35, %v2790_v4 }
 0x244   : > { %v2842_v7 = vmax.f32 %v2834_v51, 0.0  ;;  %v2832_v37 = vadd.f32 %v2824_v31, %v2703_v2  ;;  %v2706_v3 = vadd.f32 %v4362_v53, %v2691_v47  ;;  %v2689_v8 = vmul.f32 %v4353_v43, %v2674_v57 }
 0x245   : > { %v2679_v15 = vadd.f32 %v3314_v12, %v2521_v0  ;;  %v2658_v26 = vpop.f32.mrf.mxu0  ;;  %v2829_v60 = vadd.f32 %v4348_v30, %v2814_v63 }
 0x246   : > { %2850 = vst.msk [vmem:[%s4388_s29 + $0x10] sm:$0xff] %vm1325_vm12, %v2842_v7  ;;  %v2840_v27 = vmax.f32 %v2832_v37, 0.0  ;;  %v2835_v23 = vadd.f32 %v2827_v38, %v2706_v3  ;;  %v2704_v52 = vadd.f32 %v4362_v53, %v2689_v8  ;;  %v2677_v40 = vadd.f32 %v2658_v26, %v2519_v62 }
 0x247   : > { %v2694_v6 = vmul.f32 %v4353_v43, %v2679_v15  ;;  %v3315_v42 = vpop.f32.mrf.mxu0 }
 0x248   : > { %2848 = vst.msk [vmem:[%s4388_s29] sm:$0xff] %vm1325_vm12, %v2840_v27  ;;  %v2843_v17 = vmax.f32 %v2835_v23, 0.0  ;;  %v2833_v56 = vadd.f32 %v2825_v50, %v2704_v52  ;;  %v2692_v28 = vmul.f32 %v4353_v43, %v2677_v40  ;;  %v2680_v33 = vadd.f32 %v3315_v42, %v2522_v59 }
 0x249   : > { %v2709_v45 = vadd.f32 %v4362_v53, %v2694_v6  ;;  %v2661_v61 = vpop.f32.mrf.mxu0 }
 0x24a   : > { %2851 = vst.msk [vmem:[%s4388_s29 + $0x18] sm:$0xff] %vm1325_vm12, %v2843_v17  ;;  %v2841_v5 = vmax.f32 %v2833_v56, 0.0  ;;  %v2707_v48 = vadd.f32 %v4362_v53, %v2692_v28  ;;  %v2695_v54 = vmul.f32 %v4353_v43, %v2680_v33  ;;  %v2678_v9 = vadd.f32 %v2661_v61, %v2520_v20 }
 0x24b   : > { %v2838_v55 = vadd.f32 %v2830_v21, %v2709_v45 }
 0x24c   : > { %2849 = vst.msk [vmem:[%s4388_s29 + $0x8] sm:$0xff] %vm1325_vm12, %v2841_v5  ;;  %v2836_v16 = vadd.f32 %v2828_v25, %v2707_v48  ;;  %v2710_v35 = vadd.f32 %v4362_v53, %v2695_v54  ;;  %v2693_v11 = vmul.f32 %v4353_v43, %v2678_v9 }
 0x24d   : > { %v2846_v32 = vmax.f32 %v2838_v55, 0.0 }
 0x24e   : > { %v2844_v39 = vmax.f32 %v2836_v16, 0.0  ;;  %v2839_v22 = vadd.f32 %v2831_v58, %v2710_v35  ;;  %v2708_v19 = vadd.f32 %v4362_v53, %v2693_v11 }
 0x24f   : > { %2854 = vst.msk [vmem:[%s4388_s29 + $0x30] sm:$0xff] %vm1325_vm12, %v2846_v32 }
 0x250   : > { %2852 = vst.msk [vmem:[%s4388_s29 + $0x20] sm:$0xff] %vm1325_vm12, %v2844_v39  ;;  %v2847_v24 = vmax.f32 %v2839_v22, 0.0  ;;  %v2837_v46 = vadd.f32 %v2829_v60, %v2708_v19 }
 0x252   : > { %2855 = vst.msk [vmem:[%s4388_s29 + $0x38] sm:$0xff] %vm1325_vm12, %v2847_v24  ;;  %v2845_v30 = vmax.f32 %v2837_v46, 0.0 }
 0x254   : > { %2853 = vst.msk [vmem:[%s4388_s29 + $0x28] sm:$0xff] %vm1325_vm12, %v2845_v30 }
 0x255   : > { %3417 = shalt.err (!%p3414_p3)
}
 0x256   : > { %s3418_s25 = scalar_lea.hbm %s4423_s20, 1024  ;;  %s3422_s12 = scalar_lea.hbm %s4483_s10, 2048 }
 0x257   : > { %p3419_p4 = scmp.ne.s32.totalorder %s4423_s20, %s3418_s25  ;;  %p3423_p9 = scmp.lt.s32.totalorder %s4423_s20, %s4483_s10 }
 0x258   : > { %p3424_p10 = scmp.lt.s32.totalorder %s3422_s12, %s3418_s25 }
 0x259   : > { %p3420_p7 = pnand %p3419_p4, %p3564_p5 }
 0x25a   : > { %p3425_p11 = por %p3424_p10, %p3423_p9 }
 0x25b   : > { %p3421_p8 = pneg %p3420_p7 }
 0x25d   : > { %p3426_p12 = pnand %p3425_p11, %p3421_p8 }
 0x25f   : > { %3429 = shalt.err (!%p3426_p12)
}
 0x260   : > { %s3469_s21 = smov 128   ;;  %s3470_s27 = smov 8  }
 0x261   : > { %3337 = dma.vmem_to_hbm [thread:$0]  (%p3564_p5), %s4425_s11, 1024, %s4423_s20, %s4433_s17, %s3469_s21, %s3469_s21, %s3470_s27  }
 0x262 PF: > { %p3343_p13 = scmp.ge.s32.totalorder %s3464_s16, 2  ;;  %s2885_s28 = sand.u32 1, %s3452_s13  }
 0x263   : > { %s2886_s25 = scalar_lea.sflag [#allocation4], %s2885_s28 }
 0x264   : > { %p3340_p0 = pnand %p3343_p13, %p3568_p6 }
 0x266   : > { %p3341_p1 = pneg %p3340_p0 }
 0x268   : > { %3447 = dma.done.wait (%p3341_p1), %s2886_s25, 1024  }
 0x269   : > { %3449 = vsyncadd (%p3341_p1), %s2886_s25, 4294966272  ;;  %p20_p2 = scmp.ge.s32.totalorder %s3551_s19, 4   ;;  %s4506_s13 = smov %s3456_s14 }
 0x26a   : > { %s4507_s14 = smov %s3460_s15  ;;  %s4508_s15 = smov %s3562_s22 }
 0x26b   : > { %s4509_s16 = smov %s3551_s19  ;;  %22 = sbr.rel (!%p20_p2) target bundleno = 3 (0x3), region = 109 }
 0x270   :  { %2891 = vsyncpa [#allocation4], 1 }
 0x271   :  { %2893 = vsyncpa [#allocation4 + $0x1], 1 }

</bundles_post_ra>
